<compile_context>
chip_gen: v7x
topology: tpu7x:2x2x1
jax: 0.10.0
libtpu: 0.0.40
codegen_flags: <defaults>
</compile_context>

<pallas_src>
import math

import jax
import jax.numpy as jnp
from jax.experimental import pallas as pl
from jax.experimental.pallas import tpu as pltpu

NEG_SLOPE = 0.01   # torch F.leaky_relu default
L2_EPS = 1e-12     # torch F.normalize default eps
LANE = 128


def _leaky_relu(x):
    return jnp.where(x > 0, x, NEG_SLOPE * x)


def _round_up(x, m):
    return ((x + m - 1) // m) * m


def _pad2d(x, rows, cols):
    r, c = x.shape
    if r == rows and c == cols:
        return x
    return jnp.pad(x, ((0, rows - r), (0, cols - c)))


# ----------------------------------------------------------------------------
# Pallas kernels
# ----------------------------------------------------------------------------
def ngcf_layer_kernel(adj_ref, egok_ref, egoi_ref, wgc_ref, bgc_ref,
                      wbi_ref, bbi_ref, ego_out_ref, norm_out_ref, side_acc):
    k = pl.program_id(1)

    @pl.when(k == 0)
    def _():
        side_acc[...] = jnp.zeros_like(side_acc)

    # side_embeddings accumulation: A[i, k] @ ego[k]  (bf16 operands, f32 MXU accumulation)
    side_acc[...] += jnp.dot(adj_ref[...], egok_ref[...],
                             preferred_element_type=jnp.float32)

    @pl.when(k == pl.num_programs(1) - 1)
    def _():
        side = side_acc[...]
        ego = egoi_ref[...]
        # sum_embeddings = leaky_relu(GC_Linear(side))
        sum_emb = _leaky_relu(
            jnp.dot(side.astype(jnp.bfloat16), wgc_ref[...],
                    preferred_element_type=jnp.float32) + bgc_ref[...])
        # bi_embeddings = leaky_relu(Bi_Linear(ego * side))
        bi_emb = _leaky_relu(
            jnp.dot((ego * side).astype(jnp.bfloat16), wbi_ref[...],
                    preferred_element_type=jnp.float32) + bbi_ref[...])
        new_ego = sum_emb + bi_emb                 # mess_dropout == identity (eval mode)
        ego_out_ref[...] = new_ego
        # F.normalize(new_ego, p=2, dim=1): x / max(||x||, eps) == x * rsqrt(max(||x||^2, eps^2))
        sumsq = jnp.sum(new_ego * new_ego, axis=1, keepdims=True)
        inv = jax.lax.rsqrt(jnp.maximum(sumsq, L2_EPS * L2_EPS))
        norm_out_ref[...] = new_ego * inv


def bce_loss_kernel(u_ref, i_ref, y_ref, m_ref, out_ref, acc_ref):
    b = pl.program_id(0)

    @pl.when(b == 0)
    def _():
        acc_ref[0] = 0.0

    # predict = sum(u * i, dim=1); stable BCEWithLogits; mask out padded rows.
    logits = jnp.sum(u_ref[...] * i_ref[...], axis=1, keepdims=True)   # (tb, 1)
    y = y_ref[...]
    loss = jnp.maximum(logits, 0.0) - logits * y + jnp.log1p(jnp.exp(-jnp.abs(logits)))
    acc_ref[0] += jnp.sum(loss * m_ref[...])

    @pl.when(b == pl.num_programs(0) - 1)
    def _():
        out_ref[0, 0] = acc_ref[0]


# ----------------------------------------------------------------------------
# pallas_call wrappers
# ----------------------------------------------------------------------------
def ngcf_layer(adj_bf16, ego_f32, w_gc, b_gc, w_bi, b_bi, *, tm=256, tk=256):
    """One NGCF propagation layer. All arrays already padded: N % tm == N % tk == 0,
    feature dims multiples of 128. Returns (new_ego_f32, norm_f32)."""
    n = adj_bf16.shape[0]
    d_in = ego_f32.shape[1]
    d_out = w_gc.shape[1]

    ego_b = ego_f32.astype(jnp.bfloat16)
    w_gc_b = w_gc.astype(jnp.bfloat16)
    w_bi_b = w_bi.astype(jnp.bfloat16)

    cost = pl.CostEstimate(
        flops=2 * n * n * d_in + 4 * n * d_in * d_out,
        transcendentals=n,
        bytes_accessed=2 * n * n + 6 * n * d_in + 2 * d_in * d_out * 2 + 8 * n * d_out)

    return pl.pallas_call(
        ngcf_layer_kernel,
        out_shape=(jax.ShapeDtypeStruct((n, d_out), jnp.float32),
                   jax.ShapeDtypeStruct((n, d_out), jnp.float32)),
        grid_spec=pltpu.PrefetchScalarGridSpec(
            num_scalar_prefetch=0,
            grid=(n // tm, n // tk),
            in_specs=[
                pl.BlockSpec((tm, tk), lambda i, k: (i, k)),        # adj tile (bf16)
                pl.BlockSpec((tk, d_in), lambda i, k: (k, 0)),      # ego K-tile (bf16)
                pl.BlockSpec((tm, d_in), lambda i, k: (i, 0)),      # ego row-tile (f32)
                pl.BlockSpec((d_in, d_out), lambda i, k: (0, 0)),   # W_gc (bf16), resident
                pl.BlockSpec((1, d_out), lambda i, k: (0, 0)),      # b_gc
                pl.BlockSpec((d_in, d_out), lambda i, k: (0, 0)),   # W_bi (bf16), resident
                pl.BlockSpec((1, d_out), lambda i, k: (0, 0)),      # b_bi
            ],
            out_specs=(pl.BlockSpec((tm, d_out), lambda i, k: (i, 0)),
                       pl.BlockSpec((tm, d_out), lambda i, k: (i, 0))),
            scratch_shapes=[pltpu.VMEM((tm, d_in), jnp.float32)],
        ),
        compiler_params=pltpu.CompilerParams(
            dimension_semantics=("parallel", "arbitrary"),
            vmem_limit_bytes=48 * 1024 * 1024),
        cost_estimate=cost,
    )(adj_bf16, ego_b, ego_f32, w_gc_b, b_gc, w_bi_b, b_bi)


def bce_with_logits(u_emb, i_emb, labels, *, tb=128):
    b, d = u_emb.shape
    tb = min(tb, _round_up(b, 8))
    bp = _round_up(b, tb)
    dp = _round_up(d, LANE)

    u_p = _pad2d(u_emb, bp, dp)
    i_p = _pad2d(i_emb, bp, dp)
    y_p = _pad2d(labels.reshape(b, 1).astype(jnp.float32), bp, 1)
    m_p = _pad2d(jnp.ones((b, 1), jnp.float32), bp, 1)

    total = pl.pallas_call(
        bce_loss_kernel,
        out_shape=jax.ShapeDtypeStruct((1, 1), jnp.float32),
        grid_spec=pltpu.PrefetchScalarGridSpec(
            num_scalar_prefetch=0,
            grid=(bp // tb,),
            in_specs=[
                pl.BlockSpec((tb, dp), lambda i: (i, 0)),
                pl.BlockSpec((tb, dp), lambda i: (i, 0)),
                pl.BlockSpec((tb, 1), lambda i: (i, 0)),
                pl.BlockSpec((tb, 1), lambda i: (i, 0)),
            ],
            out_specs=pl.BlockSpec((1, 1), lambda i: (0, 0)),
            scratch_shapes=[pltpu.SMEM((1,), jnp.float32)],
        ),
        compiler_params=pltpu.CompilerParams(
            dimension_semantics=("arbitrary",)),
    )(u_p, i_p, y_p, m_p)
    return total[0, 0] / b


# ----------------------------------------------------------------------------
# Model_Wrapper.forward equivalent
# ----------------------------------------------------------------------------
def ngcf_embeddings(params, norm_adj, n_users, n_items, *, tm=256, tk=256):
    # ego = cat(user_embedding.weight[:-1], item_embedding.weight)
    ego = jnp.concatenate([params['user_emb'][:-1], params['item_emb']], axis=0)
    n, d0 = ego.shape

    step = tm * tk // math.gcd(tm, tk)
    n_pad = _round_up(n, step)
    adj_p = _pad2d(norm_adj, n_pad, n_pad).astype(jnp.bfloat16)   # cast once, reused per layer

    dims = [d0] + [w.shape[1] for (w, _, _, _) in params['layers']]
    dims_p = [_round_up(d, LANE) for d in dims]

    ego_p = _pad2d(ego, n_pad, dims_p[0])
    all_e = [ego]
    for li, (w_gc, b_gc, w_bi, b_bi) in enumerate(params['layers']):
        din_p, dout_p = dims_p[li], dims_p[li + 1]
        wgc_p = _pad2d(w_gc, din_p, dout_p)
        bgc_p = _pad2d(b_gc, 1, dout_p)
        wbi_p = _pad2d(w_bi, din_p, dout_p)
        bbi_p = _pad2d(b_bi, 1, dout_p)
        ego_p, norm_p = ngcf_layer(adj_p, ego_p, wgc_p, bgc_p, wbi_p, bbi_p, tm=tm, tk=tk)
        all_e.append(norm_p[:n, :dims[li + 1]])
    all_e = jnp.concatenate(all_e, axis=1)
    return all_e[:n_users], all_e[n_users:]


def model_forward(params, norm_adj, n_users, n_items, user, item, labels, flag):
    ua, ia = ngcf_embeddings(params, norm_adj, n_users, n_items)
    if flag == 1:
        return ua, ia
    u_g = ua[user]
    i_g = ia[item]
    return bce_with_logits(u_g, i_g, labels)


# ----------------------------------------------------------------------------
# Pure-JAX reference (mirrors the kernel's bf16-operand / f32-accumulate matmuls)
# ----------------------------------------------------------------------------
def reference_forward(params, norm_adj, n_users, n_items, user, item, labels):
    ego = jnp.concatenate([params['user_emb'][:-1], params['item_emb']], axis=0)
    adj_b = norm_adj.astype(jnp.bfloat16)
    all_e = [ego]
    for (w_gc, b_gc, w_bi, b_bi) in params['layers']:
        side = jnp.dot(adj_b, ego.astype(jnp.bfloat16),
                       preferred_element_type=jnp.float32)
        sum_e = _leaky_relu(jnp.dot(side.astype(jnp.bfloat16), w_gc.astype(jnp.bfloat16),
                                    preferred_element_type=jnp.float32) + b_gc)
        bi_e = _leaky_relu(jnp.dot((ego * side).astype(jnp.bfloat16), w_bi.astype(jnp.bfloat16),
                                   preferred_element_type=jnp.float32) + b_bi)
        ego = sum_e + bi_e
        sumsq = jnp.sum(ego * ego, axis=1, keepdims=True)
        all_e.append(ego * jax.lax.rsqrt(jnp.maximum(sumsq, L2_EPS * L2_EPS)))
    all_e = jnp.concatenate(all_e, axis=1)
    ua, ia = all_e[:n_users], all_e[n_users:]
    logits = jnp.sum(ua[user] * ia[item], axis=1)
    y = labels.astype(jnp.float32)
    loss = jnp.maximum(logits, 0.0) - logits * y + jnp.log1p(jnp.exp(-jnp.abs(logits)))
    return jnp.mean(loss), ua, ia


# ----------------------------------------------------------------------------
# Deterministic parameter / input construction
# ----------------------------------------------------------------------------
def build_params(key, n_users, n_items, embed_dim, layer_sizes):
    keys = jax.random.split(key, 2 + 4 * len(layer_sizes))

    def xavier(k, shape):
        bound = (6.0 / (shape[0] + shape[1])) ** 0.5
        return jax.random.uniform(k, shape, jnp.float32, -bound, bound)

    params = {
        'user_emb': xavier(keys[0], (n_users + 1, embed_dim)),
        'item_emb': xavier(keys[1], (n_items, embed_dim)),
        'layers': [],
    }
    dims = [embed_dim] + list(layer_sizes)
    for i in range(len(layer_sizes)):
        d_in, d_out = dims[i], dims[i + 1]
        kb = keys[2 + 4 * i: 2 + 4 * (i + 1)]
        bound = 1.0 / (d_in ** 0.5)
        w_gc = jax.random.uniform(kb[0], (d_in, d_out), jnp.float32, -bound, bound)
        b_gc = jax.random.uniform(kb[1], (1, d_out), jnp.float32, -bound, bound)
        w_bi = jax.random.uniform(kb[2], (d_in, d_out), jnp.float32, -bound, bound)
        b_bi = jax.random.uniform(kb[3], (1, d_out), jnp.float32, -bound, bound)
        params['layers'].append((w_gc, b_gc, w_bi, b_bi))
    return params


def build_norm_adj(key, n_users, n_items):
    # synthetic bipartite interactions -> symmetric adjacency -> row-normalized
    r = (jax.random.uniform(key, (n_users, n_items)) < 0.1).astype(jnp.float32)
    n = n_users + n_items
    adj = jnp.zeros((n, n), jnp.float32)
    adj = adj.at[:n_users, n_users:].set(r)
    adj = adj.at[n_users:, :n_users].set(r.T)
    deg = jnp.sum(adj, axis=1, keepdims=True)
    return adj / jnp.maximum(deg, 1.0)


if __name__ == "__main__":
    key = jax.random.PRNGKey(0)
    k_param, k_adj, k_u, k_i, k_y = jax.random.split(key, 5)

    n_users, n_items = 120, 180        # N = 300 -> padded to 512 -> 2x2 layer grid
    embed_dim = 32
    layer_sizes = [32, 32]             # n_layers = 2, concat dim = 96
    batch = 256                        # -> 2 batch tiles in the loss kernel

    params = build_params(k_param, n_users, n_items, embed_dim, layer_sizes)
    norm_adj = build_norm_adj(k_adj, n_users, n_items)

    user = jax.random.randint(k_u, (batch,), 0, n_users)
    item = jax.random.randint(k_i, (batch,), 0, n_items)
    labels = (jax.random.uniform(k_y, (batch,)) < 0.5).astype(jnp.float32)

    # flag = 0 path: rec loss
    loss = model_forward(params, norm_adj, n_users, n_items, user, item, labels, flag=0)
    loss = jax.block_until_ready(loss)

    # flag = 1 path: propagated embeddings
    ua, ia = model_forward(params, norm_adj, n_users, n_items, user, item, labels, flag=1)
    jax.block_until_ready((ua, ia))

    ref_loss, ref_ua, ref_ia = reference_forward(
        params, norm_adj, n_users, n_items, user, item, labels)

    assert ua.shape == (n_users, embed_dim * (len(layer_sizes) + 1))
    assert ia.shape == (n_items, embed_dim * (len(layer_sizes) + 1))
    assert float(jnp.max(jnp.abs(ua - ref_ua))) < 1e-2
    assert float(jnp.max(jnp.abs(ia - ref_ia))) < 1e-2
    assert float(jnp.abs(loss - ref_loss)) < 1e-2, (loss, ref_loss)

    print("KERNEL_OK")
</pallas_src>

<mosaic_0001>
module attributes {stable_mosaic.version = 11 : i64} {
  func.func @ngcf_layer_kernel(%arg0: i32, %arg1: i32, %arg2: memref<256x256xbf16, #tpu.memory_space<vmem>>, %arg3: memref<256x128xbf16, #tpu.memory_space<vmem>>, %arg4: memref<256x128xf32, #tpu.memory_space<vmem>>, %arg5: memref<128x128xbf16, #tpu.memory_space<vmem>>, %arg6: memref<1x128xf32, #tpu.memory_space<vmem>>, %arg7: memref<128x128xbf16, #tpu.memory_space<vmem>>, %arg8: memref<1x128xf32, #tpu.memory_space<vmem>>, %arg9: memref<256x128xf32, #tpu.memory_space<vmem>>, %arg10: memref<256x128xf32, #tpu.memory_space<vmem>>, %arg11: memref<256x128xf32, #tpu.memory_space<vmem>>) attributes {dimension_semantics = [#tpu.dimension_semantics<parallel>, #tpu.dimension_semantics<arbitrary>], iteration_bounds = array<i64: 2, 2>, scalar_prefetch = 0 : i64, scratch_operands = 1 : i64, tpu.core_type = #tpu.core_type<tc>, window_params = [{transform_indices = @transform_0, window_bounds = array<i64: 256, 256>}, {transform_indices = @transform_1, window_bounds = array<i64: 256, 128>}, {transform_indices = @transform_2, window_bounds = array<i64: 256, 128>}, {pipeline_mode = #tpu.pipeline_mode<synchronous>, transform_indices = @transform_3, window_bounds = array<i64: 128, 128>}, {pipeline_mode = #tpu.pipeline_mode<synchronous>, transform_indices = @transform_4, window_bounds = array<i64: 1, 128>}, {pipeline_mode = #tpu.pipeline_mode<synchronous>, transform_indices = @transform_5, window_bounds = array<i64: 128, 128>}, {pipeline_mode = #tpu.pipeline_mode<synchronous>, transform_indices = @transform_6, window_bounds = array<i64: 1, 128>}, {transform_indices = @transform_7, window_bounds = array<i64: 256, 128>}, {transform_indices = @transform_8, window_bounds = array<i64: 256, 128>}]} {
    %c0_i32 = arith.constant 0 : i32
    %0 = arith.cmpi eq, %arg1, %c0_i32 : i32
    %1 = arith.extui %0 : i1 to i32
    %c0_i32_0 = arith.constant 0 : i32
    %2 = arith.cmpi ne, %1, %c0_i32_0 : i32
    scf.if %2 {
      %cst_9 = arith.constant 0.000000e+00 : f32
      %12 = vector.broadcast %cst_9 : f32 to vector<256x128xf32>
      %c0_10 = arith.constant 0 : index
      %c0_11 = arith.constant 0 : index
      %13 = vector.load %arg11[%c0_10, %c0_11] : memref<256x128xf32, #tpu.memory_space<vmem>>, vector<256x128xf32>
      tpu.vector_store %arg11[%c0_10, %c0_11], %12 {strides = array<i32>} : memref<256x128xf32, #tpu.memory_space<vmem>>, vector<256x128xf32>,
    } else {
    }
    %c0 = arith.constant 0 : index
    %c0_1 = arith.constant 0 : index
    %3 = vector.load %arg11[%c0, %c0_1] : memref<256x128xf32, #tpu.memory_space<vmem>>, vector<256x128xf32>
    %c0_2 = arith.constant 0 : index
    %c0_3 = arith.constant 0 : index
    %4 = vector.load %arg2[%c0_2, %c0_3] : memref<256x256xbf16, #tpu.memory_space<vmem>>, vector<256x256xbf16>
    %c0_4 = arith.constant 0 : index
    %c0_5 = arith.constant 0 : index
    %5 = vector.load %arg3[%c0_4, %c0_5] : memref<256x128xbf16, #tpu.memory_space<vmem>>, vector<256x128xbf16>
    %cst = arith.constant dense<0.000000e+00> : vector<256x128xf32>
    %6 = tpu.matmul %4, %5, %cst {dimension_numbers = #tpu.dot_dimension_numbers<[1], [0], [0], [1], [0, 0, 1, 1], [], []>} : vector<256x256xbf16>, vector<256x128xbf16>, vector<256x128xf32> -> vector<256x128xf32>
    %7 = arith.addf %3, %6 : vector<256x128xf32>
    %c0_6 = arith.constant 0 : index
    %c0_7 = arith.constant 0 : index
    %8 = vector.load %arg11[%c0_6, %c0_7] : memref<256x128xf32, #tpu.memory_space<vmem>>, vector<256x128xf32>
    tpu.vector_store %arg11[%c0_6, %c0_7], %7 {strides = array<i32>} : memref<256x128xf32, #tpu.memory_space<vmem>>, vector<256x128xf32>,
    %c1_i32 = arith.constant 1 : i32
    %9 = arith.cmpi eq, %arg1, %c1_i32 : i32
    %10 = arith.extui %9 : i1 to i32
    %c0_i32_8 = arith.constant 0 : i32
    %11 = arith.cmpi ne, %10, %c0_i32_8 : i32
    scf.if %11 {
      %c0_9 = arith.constant 0 : index
      %c0_10 = arith.constant 0 : index
      %12 = vector.load %arg11[%c0_9, %c0_10] : memref<256x128xf32, #tpu.memory_space<vmem>>, vector<256x128xf32>
      %c0_11 = arith.constant 0 : index
      %c0_12 = arith.constant 0 : index
      %13 = vector.load %arg4[%c0_11, %c0_12] : memref<256x128xf32, #tpu.memory_space<vmem>>, vector<256x128xf32>
      %14 = arith.truncf %12 : vector<256x128xf32> to vector<256x128xbf16>
      %c0_13 = arith.constant 0 : index
      %c0_14 = arith.constant 0 : index
      %15 = vector.load %arg5[%c0_13, %c0_14] : memref<128x128xbf16, #tpu.memory_space<vmem>>, vector<128x128xbf16>
      %cst_15 = arith.constant dense<0.000000e+00> : vector<256x128xf32>
      %16 = tpu.matmul %14, %15, %cst_15 {dimension_numbers = #tpu.dot_dimension_numbers<[1], [0], [0], [1], [0, 0, 1, 1], [], []>} : vector<256x128xbf16>, vector<128x128xbf16>, vector<256x128xf32> -> vector<256x128xf32>
      %c0_16 = arith.constant 0 : index
      %c0_17 = arith.constant 0 : index
      %17 = vector.load %arg6[%c0_16, %c0_17] : memref<1x128xf32, #tpu.memory_space<vmem>>, vector<1x128xf32>
      %18 = vector.broadcast %17 : vector<1x128xf32> to vector<256x128xf32>
      %19 = arith.addf %16, %18 : vector<256x128xf32>
      %cst_18 = arith.constant 0.000000e+00 : f32
      %20 = vector.broadcast %cst_18 : f32 to vector<256x128xf32>
      %21 = arith.cmpf ogt, %19, %20 : vector<256x128xf32>
      %cst_19 = arith.constant 0.00999999977 : f32
      %22 = vector.broadcast %cst_19 : f32 to vector<256x128xf32>
      %23 = arith.mulf %22, %19 : vector<256x128xf32>
      %24 = arith.select %21, %19, %23 : vector<256x128xi1>, vector<256x128xf32>
      %25 = arith.mulf %13, %12 : vector<256x128xf32>
      %26 = arith.truncf %25 : vector<256x128xf32> to vector<256x128xbf16>
      %c0_20 = arith.constant 0 : index
      %c0_21 = arith.constant 0 : index
      %27 = vector.load %arg7[%c0_20, %c0_21] : memref<128x128xbf16, #tpu.memory_space<vmem>>, vector<128x128xbf16>
      %cst_22 = arith.constant dense<0.000000e+00> : vector<256x128xf32>
      %28 = tpu.matmul %26, %27, %cst_22 {dimension_numbers = #tpu.dot_dimension_numbers<[1], [0], [0], [1], [0, 0, 1, 1], [], []>} : vector<256x128xbf16>, vector<128x128xbf16>, vector<256x128xf32> -> vector<256x128xf32>
      %c0_23 = arith.constant 0 : index
      %c0_24 = arith.constant 0 : index
      %29 = vector.load %arg8[%c0_23, %c0_24] : memref<1x128xf32, #tpu.memory_space<vmem>>, vector<1x128xf32>
      %30 = vector.broadcast %29 : vector<1x128xf32> to vector<256x128xf32>
      %31 = arith.addf %28, %30 : vector<256x128xf32>
      %cst_25 = arith.constant 0.000000e+00 : f32
      %32 = vector.broadcast %cst_25 : f32 to vector<256x128xf32>
      %33 = arith.cmpf ogt, %31, %32 : vector<256x128xf32>
      %cst_26 = arith.constant 0.00999999977 : f32
      %34 = vector.broadcast %cst_26 : f32 to vector<256x128xf32>
      %35 = arith.mulf %34, %31 : vector<256x128xf32>
      %36 = arith.select %33, %31, %35 : vector<256x128xi1>, vector<256x128xf32>
      %37 = arith.addf %24, %36 : vector<256x128xf32>
      %c0_27 = arith.constant 0 : index
      %c0_28 = arith.constant 0 : index
      %38 = vector.load %arg9[%c0_27, %c0_28] : memref<256x128xf32, #tpu.memory_space<vmem>>, vector<256x128xf32>
      tpu.vector_store %arg9[%c0_27, %c0_28], %37 {strides = array<i32>} : memref<256x128xf32, #tpu.memory_space<vmem>>, vector<256x128xf32>,
      %39 = arith.mulf %37, %37 : vector<256x128xf32>
      %cst_29 = arith.constant dense<0.000000e+00> : vector<256xf32>
      %40 = vector.multi_reduction <add>, %39, %cst_29 [1] : vector<256x128xf32> to vector<256xf32>
      %41 = vector.shape_cast %40 : vector<256xf32> to vector<256x1xf32>
      %cst_30 = arith.constant 1.000000e-24 : f32
      %42 = vector.broadcast %cst_30 : f32 to vector<256x1xf32>
      %43 = arith.maximumf %41, %42 : vector<256x1xf32>
      %44 = math.rsqrt %43 : vector<256x1xf32>
      %45 = vector.broadcast %44 : vector<256x1xf32> to vector<256x128xf32>
      %46 = arith.mulf %37, %45 : vector<256x128xf32>
      %c0_31 = arith.constant 0 : index
      %c0_32 = arith.constant 0 : index
      %47 = vector.load %arg10[%c0_31, %c0_32] : memref<256x128xf32, #tpu.memory_space<vmem>>, vector<256x128xf32>
      tpu.vector_store %arg10[%c0_31, %c0_32], %46 {strides = array<i32>} : memref<256x128xf32, #tpu.memory_space<vmem>>, vector<256x128xf32>,
    } else {
    }
    return
  }
  func.func @transform_0(%arg0: i32, %arg1: i32) -> (i32, i32) {
    %c0_i32 = arith.constant 0 : i32
    return %arg0, %arg1 : i32, i32
  }
  func.func @transform_1(%arg0: i32, %arg1: i32) -> (i32, i32) {
    %c0_i32 = arith.constant 0 : i32
    %c0_i32_0 = arith.constant 0 : i32
    return %arg1, %c0_i32 : i32, i32
  }
  func.func @transform_2(%arg0: i32, %arg1: i32) -> (i32, i32) {
    %c0_i32 = arith.constant 0 : i32
    %c0_i32_0 = arith.constant 0 : i32
    return %arg0, %c0_i32 : i32, i32
  }
  func.func @transform_3(%arg0: i32, %arg1: i32) -> (i32, i32) {
    %c0_i32 = arith.constant 0 : i32
    %c0_i32_0 = arith.constant 0 : i32
    %c0_i32_1 = arith.constant 0 : i32
    return %c0_i32, %c0_i32_0 : i32, i32
  }
  func.func @transform_4(%arg0: i32, %arg1: i32) -> (i32, i32) {
    %c0_i32 = arith.constant 0 : i32
    %c0_i32_0 = arith.constant 0 : i32
    %c0_i32_1 = arith.constant 0 : i32
    return %c0_i32, %c0_i32_0 : i32, i32
  }
  func.func @transform_5(%arg0: i32, %arg1: i32) -> (i32, i32) {
    %c0_i32 = arith.constant 0 : i32
    %c0_i32_0 = arith.constant 0 : i32
    %c0_i32_1 = arith.constant 0 : i32
    return %c0_i32, %c0_i32_0 : i32, i32
  }
  func.func @transform_6(%arg0: i32, %arg1: i32) -> (i32, i32) {
    %c0_i32 = arith.constant 0 : i32
    %c0_i32_0 = arith.constant 0 : i32
    %c0_i32_1 = arith.constant 0 : i32
    return %c0_i32, %c0_i32_0 : i32, i32
  }
  func.func @transform_7(%arg0: i32, %arg1: i32) -> (i32, i32) {
    %c0_i32 = arith.constant 0 : i32
    %c0_i32_0 = arith.constant 0 : i32
    return %arg0, %c0_i32 : i32, i32
  }
  func.func @transform_8(%arg0: i32, %arg1: i32) -> (i32, i32) {
    %c0_i32 = arith.constant 0 : i32
    %c0_i32_0 = arith.constant 0 : i32
    return %arg0, %c0_i32 : i32, i32
  }
}

</mosaic_0001>

<bundles_post_ra>
// kernel: tpu_custom_call.1
= control target key start
LH: loop header
LB: loop body
LE: loop exit
PB: predicated region body
PF: predicated region fallthrough
CT: control target
= control target key end

     0   :  { %s4530_s0 = inlined_call_operand.hbm [shape: bf16[512,512], index: 0, kind: input, shape index: {}]   ;;  %s4531_s1 = inlined_call_operand.hbm [shape: bf16[512,128], index: 1, kind: input, shape index: {}]   ;;  %s4532_s2 = inlined_call_operand.hbm [shape: f32[512,128], index: 2, kind: input, shape index: {}]   ;;  %s4533_s3 = inlined_call_operand.hbm [shape: bf16[128,128], index: 3, kind: input, shape index: {}]   ;;  %s4534_s4 = inlined_call_operand.vmem [shape: f32[1,128], index: 4, kind: input, shape index: {}]   ;;  %s4535_s5 = inlined_call_operand.hbm [shape: bf16[128,128], index: 5, kind: input, shape index: {}]   ;;  %s4536_s6 = inlined_call_operand.vmem [shape: f32[1,128], index: 6, kind: input, shape index: {}]   ;;  %s4537_s7 = inlined_call_operand.hbm [shape: f32[512,128], index: 7, kind: output, shape index: {0}]   ;;  %s4538_s8 = inlined_call_operand.hbm [shape: f32[512,128], index: 8, kind: output, shape index: {1}]  }
   0x1   :  { %4562 = sst [smem:[#allocation29_spill]] %s4530_s0 }
   0x2   :  { %4563 = sst [smem:[#allocation30_spill]] %s4531_s1 }
   0x3   :  { %4564 = sst [smem:[#allocation31_spill]] %s4532_s2 }
   0x4   :  { %4565 = sst [smem:[#allocation32_spill]] %s4533_s3 }
   0x5   :  { %4566 = sst [smem:[#allocation33_spill]] %s4534_s4 }
   0x6   :  { %4567 = sst [smem:[#allocation34_spill]] %s4535_s5 }
   0x7   :  { %4568 = sst [smem:[#allocation35_spill]] %s4536_s6 }
   0x8   :  { %4569 = sst [smem:[#allocation36_spill]] %s4537_s7 }
   0x9   :  { %4570 = sst [smem:[#allocation37_spill]] %s4538_s8 }
   0xa   :  { %14 = vsyncpa [#allocation4], 0 }
   0xb   :  { %16 = vsyncpa [#allocation4 + $0x1], 0 }
   0xc   :  { %17 = vsyncpa [#allocation7], 0 }
   0xd   :  { %19 = vsyncpa [#allocation7 + $0x1], 0 }
   0xe   :  { %20 = vsyncpa [#allocation10], 0 }
   0xf   :  { %21 = vsyncpa [#allocation5], 0 }
  0x10   :  { %23 = vsyncpa [#allocation5 + $0x1], 0 }
  0x11   :  { %24 = vsyncpa [#allocation14], 0 }
  0x12   :  { %26 = vsyncpa [#allocation14 + $0x1], 0  ;;  %s3460_s27 = smov 0   ;;  %s3462_s28 = smov 0  }
  0x13   :  { %s3464_s29 = smov 0   ;;  %s3466_s30 = smov 0  }
  0x14   :  { %s3468_s9 = smov 0   ;;  %s3470_s10 = smov 0  }
  0x15   :  { %s3472_s11 = smov 0   ;;  %s3474_s12 = smov 0  }
  0x16   :  { %s3476_s13 = smov 0   ;;  %s3478_s14 = smov 0  }
  0x17   :  { %s3480_s15 = smov 0   ;;  %s3482_s16 = smov 0  }
  0x18   :  { %s3484_s17 = smov 0   ;;  %s3486_s18 = smov 0  }
  0x19 LB: > { %4571 = sst [smem:[#allocation21_spill]] %s3362_s9  ;;  %s3531_s19 = sadd.s32 4294967295, %s3398_s18   ;;  %s3398_s18 = sphi %s3486_s18, %s32_s18   ;;  %s3394_s17 = sphi %s3484_s17, %s4644_s17   ;;  %s3390_s16 = sphi %s3482_s16, %s4643_s16   ;;  %s3386_s15 = sphi %s3480_s15, %s4642_s15   ;;  %s3382_s14 = sphi %s3478_s14, %s4641_s14   ;;  %s3378_s13 = sphi %s3476_s13, %s4640_s13   ;;  %s3374_s12 = sphi %s3474_s12, %s4639_s12   ;;  %s3370_s11 = sphi %s3472_s11, %s4638_s11   ;;  %s3366_s10 = sphi %s3470_s10, %s4632_s10   ;;  %s3362_s9 = sphi %s3468_s9, %s4631_s9   ;;  %s3358_s30 = sphi %s3466_s30, %s4630_s30   ;;  %s3354_s29 = sphi %s3464_s29, %s4637_s29   ;;  %s3350_s28 = sphi %s3462_s28, %s4636_s28   ;;  %s3346_s27 = sphi %s3460_s27, %s4635_s27  }
  0x1a   : > { %4572 = sst [smem:[#allocation22_spill]] %s3366_s10  ;;  %p2372_p0 = scmp.ge.s32.totalorder %s3398_s18, 1 }
  0x1b   : > { %4573 = sst [smem:[#allocation23_spill]] %s3382_s14  ;;  %p4542_p1 = scmp.eq.s32.totalorder %s3531_s19, 0 }
  0x1c   : > { %4574 = sst [smem:[#allocation24_spill]] %s3386_s15  ;;  %p265_p3 = scmp.lt.s32.totalorder %s3398_s18, 5 }
  0x1d   : > { %s3400_s21 = smov [#allocation9]   ;;  %s4577_s3 = sld [smem:[#allocation32_spill]] }
  0x1e   : > { %p3537_p4 = pnand %p2372_p0, %p265_p3  ;;  %s277_s22 = sshll.u32 %s3400_s21, 4  ;;  %s278_s22 = int_to_ptr.vmem [resolvable:$true] %s277_s22 }
  0x20   : > { %s4575_s20 = scalar_select %p3537_p4, 1, 0 }
  0x21   : > { %p2766_p5 = pneg %p3537_p4 }
  0x23   : > { %p3545_p6 = pnand %p2766_p5, %p4542_p1  ;;  %s3062_s26 = scalar_lea.hbm %s4577_s3, 1024 }
  0x24   : > { %p3063_p7 = scmp.ne.s32.totalorder %s4577_s3, %s3062_s26  ;;  %p3069_p11 = scmp.lt.u32.totalorder %s3062_s26, %s4577_s3 }
  0x25   : > { %p4556_p8 = pneg %p3545_p6 }
  0x27   : > { %p3065_p9 = pnand %p4556_p8, %p3063_p7 }
  0x29   : > { %p3066_p10 = pneg %p3065_p9 }
  0x2b   : > { %p3071_p12 = pnand %p3069_p11, %p3066_p10 }
  0x2d   : > { %3074 = shalt.err (!%p3071_p12)
}
  0x2e   : > { %s3075_s24 = scalar_lea.vmem %s278_s22, 1024  ;;  %p3083_p5 = scmp.lt.s32.totalorder %s278_s22, %s278_s22 }
  0x2f   : > { %p3076_p13 = scmp.ne.s32.totalorder %s278_s22, %s3075_s24  ;;  %p3084_p2 = scmp.lt.s32.totalorder %s3075_s24, %s3075_s24 }
  0x31   : > { %p3078_p0 = pnand %p3076_p13, %p4556_p8  ;;  %p3085_p1 = por %p3084_p2, %p3083_p5 }
  0x33   : > { %p3079_p3 = pneg %p3078_p0 }
  0x35   : > { %p3086_p4 = pnand %p3085_p1, %p3079_p3 }
  0x37   : > { %3089 = shalt.err (!%p3086_p4)
}
  0x38   : > { %s4544_s7 = smov 64   ;;  %s4546_s8 = smov 4  }
  0x39   : > { %2769 = dma.hbm_to_vmem [thread:$0]  (!%p3545_p6), %s4577_s3, 1024, %s278_s22, [#allocation10], %s4544_s7, %s4544_s7, %s4546_s8  }
  0x3a   : > { %s41_s26 = sadd.s32 1, %s3390_s16  ;;  %s44_s21 = sadd.s32 1, %s3394_s17 }
  0x3b   : > { %p42_p1 = scmp.ge.s32.totalorder %s41_s26, 2  ;;  %p4555_p2 = scmp.eq.s32.totalorder %s3398_s18, 0 }
  0x3c   : > { %s79_s24 = sadd.s32 1, %s3366_s10  ;;  %p86_p4 = scmp.ne.s32.totalorder %s3366_s10, %s3362_s9 }
  0x3d   : > { %s4646_s26 = smov (%p42_p1, %s41_s26), 0  ;;  %s4648_s21 = smov (!%p42_p1, %s44_s21), %s3394_s17 }
  0x3e   : > { %4578 = sst [smem:[#allocation25_spill]] %s4646_s26  ;;  %s49_s6 = ssub.s32 %s3390_s16, %s4646_s26 }
  0x3f   : > { %p3587_p7 = por %p86_p4, %p4555_p2  ;;  %p46_p9 = scmp.ge.s32.totalorder %s4648_s21, 2 }
  0x40   : > { %p77_p10 = scmp.eq.s32.totalorder %s49_s6, 0  ;;  %p92_p11 = scmp.ne.s32.totalorder %s3362_s9, %s3358_s30 }
  0x41   : > { %p4554_p12 = scmp.lt.s32.totalorder %s3398_s18, 4  ;;  %s4650_s21 = smov (%p46_p9, %s4648_s21), 0 }
  0x42   : > { %4580 = sst [smem:[#allocation26_spill]] %s4650_s21  ;;  %s3601_s25 = ssub.s32 %s3394_s17, %s4650_s21 }
  0x43   : > { %s3597_s15 = scalar_select %p77_p10, %s3366_s10, %s79_s24  }
  0x44   : > { %p4582_p13 = scmp.eq.s32.totalorder %s3531_s19, 0  ;;  %s50_s8 = sor.u32 %s49_s6, %s3601_s25 }
  0x45   : > { %4581 = sst [smem:[#allocation27_spill]] %s3597_s15  ;;  %p3611_p5 = scmp.eq.s32.totalorder %s50_s8, 0 }
  0x46   : > { %p3605_p0 = por %p92_p11, %p4582_p13  ;;  %s334_s3 = sand.u32 1, %s3398_s18  }
  0x47   : > { %s4585_s30 = scalar_select %p3611_p5, 1, 0 }
  0x48   : > { %s4583_s7 = scalar_select %p3605_p0, 1, 0 }
  0x49   : > { %s336_s26 = sand.u32 1, %s3366_s10   ;;  %s2472_s24 = sshll.u32 %s3390_s16, 11 }
  0x4a   : > { %4584 = sst [smem:[#allocation28_spill]] %s4583_s7  ;;  %s2381_s4 = sshll.u32 %s336_s26, 7 }
  0x4b   : > { %s4586_s1 = sld [smem:[#allocation30_spill]]  ;;  %s338_s9 = scalar_lea.vmem [#allocation6], %s2381_s4 }
  0x4c   : > { %s345_s6 = sshll.u32 %s338_s9, 4  ;;  %p3627_p1 = pnand %p4554_p12, %p3587_p7  ;;  %s3631_s6 = int_to_ptr.vmem [resolvable:$true] %s345_s6 }
  0x4d   : > { %s3403_s26 = smov [#allocation11]   ;;  %s3635_s15 = scalar_lea.sflag [#allocation7], %s334_s3 }
  0x4e   : > { %s3633_s21 = sshll.u32 %s3403_s26, 4  ;;  %p3092_p9 = pneg %p3627_p1  ;;  %s294_s21 = int_to_ptr.vmem [resolvable:$true] %s3633_s21 }
  0x51   : > { %s3621_s14 = scalar_lea.hbm %s4586_s1, %s2472_s24  ;;  %s3095_s22 = scalar_lea.hbm %s4586_s1, 4096 }
  0x52   : > { %s3090_s24 = scalar_lea.hbm %s3621_s14, 2048  ;;  %p3096_p11 = scmp.lt.u32.totalorder %s3621_s14, %s4586_s1 }
  0x53   : > { %p3091_p4 = scmp.ne.s32.totalorder %s3621_s14, %s3090_s24  ;;  %p3097_p13 = scmp.lt.u32.totalorder %s3095_s22, %s3090_s24 }
  0x54   : > { %p3099_p12 = scmp.lt.u32.totalorder %s3090_s24, %s3621_s14 }
  0x55   : > { %p3093_p10 = pnand %p3092_p9, %p3091_p4  ;;  %p3098_p3 = por %p3097_p13, %p3096_p11 }
  0x57   : > { %p3094_p7 = pneg %p3093_p10  ;;  %p3100_p2 = por %p3099_p12, %p3098_p3 }
  0x59   : > { %p3101_p8 = pnand %p3100_p2, %p3094_p7 }
  0x5b   : > { %3104 = shalt.err (!%p3101_p8)
}
  0x5c   : > { %s3105_s3 = scalar_lea.vmem %s3631_s6, 2048  ;;  %s3404_s26 = smov [#allocation6]  }
  0x5d   : > { %p3106_p4 = scmp.ne.s32.totalorder %s3631_s6, %s3105_s3  ;;  %s3110_s4 = sshll.u32 %s3404_s26, 4  ;;  %s3111_s4 = int_to_ptr.vmem [resolvable:$false] %s3110_s4 }
  0x5e   : > { %s3112_s10 = scalar_lea.vmem %s3111_s4, 4096  ;;  %p3113_p5 = scmp.lt.s32.totalorder %s3631_s6, %s3111_s4 }
  0x5f   : > { %p3108_p10 = pnand %p3106_p4, %p3092_p9  ;;  %p3114_p11 = scmp.lt.s32.totalorder %s3112_s10, %s3105_s3 }
  0x61   : > { %p3109_p0 = pneg %p3108_p10  ;;  %p3115_p13 = por %p3114_p11, %p3113_p5 }
  0x63   : > { %p3116_p12 = pnand %p3115_p13, %p3109_p0 }
  0x65   : > { %3119 = shalt.err (!%p3116_p12)
}
  0x66   : > { %s4588_s7 = smov 4   ;;  %s4589_s24 = smov 64  }
  0x67   : > { %2779 = dma.hbm_to_vmem [thread:$0]  (!%p3627_p1), %s3621_s14, 2048, %s3631_s6, %s3635_s15, %s4589_s24, %s4589_s24, %s4588_s7  }
  0x68   : > { %s4590_s5 = sld [smem:[#allocation34_spill]]  ;;  %p4591_p2 = pneg %p3545_p6 }
  0x6e   : > { %s3120_s26 = scalar_lea.hbm %s4590_s5, 1024 }
  0x6f   : > { %p3121_p8 = scmp.ne.s32.totalorder %s4590_s5, %s3120_s26  ;;  %p3127_p5 = scmp.lt.u32.totalorder %s3120_s26, %s4590_s5 }
  0x71   : > { %p3123_p0 = pnand %p3121_p8, %p4591_p2 }
  0x73   : > { %p3124_p3 = pneg %p3123_p0 }
  0x75   : > { %p3129_p9 = pnand %p3127_p5, %p3124_p3 }
  0x77   : > { %3132 = shalt.err (!%p3129_p9)
}
  0x78   : > { %s3133_s14 = scalar_lea.vmem %s294_s21, 1024  ;;  %p4592_p7 = pmov %p4591_p2 }
  0x79   : > { %p3134_p1 = scmp.ne.s32.totalorder %s294_s21, %s3133_s14  ;;  %p3141_p11 = scmp.lt.s32.totalorder %s294_s21, %s294_s21 }
  0x7a   : > { %p3142_p13 = scmp.lt.s32.totalorder %s3133_s14, %s3133_s14 }
  0x7b   : > { %p3136_p4 = pnand %p3134_p1, %p4592_p7 }
  0x7c   : > { %p3143_p12 = por %p3142_p13, %p3141_p11 }
  0x7d   : > { %p3137_p10 = pneg %p3136_p4 }
  0x7f   : > { %p3144_p2 = pnand %p3143_p12, %p3137_p10 }
  0x81   : > { %3147 = shalt.err (!%p3144_p2)
}
  0x82   : > { %2772 = dma.hbm_to_vmem [thread:$0]  (!%p3545_p6), %s4590_s5, 1024, %s294_s21, [#allocation10], %s4589_s24, %s4589_s24, %s4588_s7  }
  0x83   : > { %s53_s23 = sadd.s32 1, %s3378_s13  ;;  %p4593_p8 = scmp.ne.s32.totalorder %s4585_s30, 0 }
  0x84   : > { %p60_p0 = scmp.ne.s32.totalorder %s3378_s13, %s3374_s12  ;;  %p66_p3 = scmp.ne.s32.totalorder %s3374_s12, %s3370_s11 }
  0x85   : > { %s3694_s22 = scalar_select %p4593_p8, %s3378_s13, %s53_s23  }
  0x86   : > { %s310_s26 = sand.u32 1, %s3378_s13   ;;  %s2378_s3 = sshll.u32 %s3390_s16, 1 }
  0x87   : > { %p4594_p5 = scmp.eq.s32.totalorder %s3398_s18, 0  ;;  %p4595_p1 = scmp.eq.s32.totalorder %s3531_s19, 0 }
  0x88   : > { %s2376_s8 = sshll.u32 %s310_s26, 8  ;;  %s2471_s10 = sshll.u32 %s3394_s17, 7 }
  0x89   : > { %p62_p9 = por %p4594_p5, %p60_p0  ;;  %p3706_p7 = por %p4595_p1, %p66_p3 }
  0x8a   : > { %s321_s14 = sadd.s32 %s2471_s10, %s2378_s3  ;;  %s314_s21 = scalar_lea.vmem [#allocation3], %s2376_s8 }
  0x8b   : > { %s324_s7 = sshll.u32 %s314_s21, 4  ;;  %s2380_s30 = sshll.u32 %s321_s14, 6  ;;  %s3711_s7 = int_to_ptr.vmem [resolvable:$true] %s324_s7 }
  0x8c   : > { %s4597_s0 = sld [smem:[#allocation29_spill]]  ;;  %p4598_p6 = scmp.lt.s32.totalorder %s3398_s18, 4 }
  0x8d   : > { %s3724_s23 = scalar_lea.sflag [#allocation4], %s310_s26 }
  0x8e   : > { %p3720_p4 = pnand %p4598_p6, %p62_p9 }
  0x90   : > { %p3150_p11 = pneg %p3720_p4 }
  0x92   : > { %s3716_s11 = scalar_lea.hbm %s4597_s0, %s2380_s30  ;;  %s3153_s14 = scalar_lea.hbm %s4597_s0, 16384 }
  0x93   : > { %s3148_s3 = scalar_lea.hbm %s3716_s11, 4096  ;;  %p3154_p2 = scmp.lt.u32.totalorder %s3716_s11, %s4597_s0 }
  0x94   : > { %p3149_p10 = scmp.ne.s32.totalorder %s3716_s11, %s3148_s3  ;;  %p3155_p8 = scmp.lt.u32.totalorder %s3153_s14, %s3148_s3 }
  0x95   : > { %p3157_p3 = scmp.lt.u32.totalorder %s3148_s3, %s3716_s11 }
  0x96   : > { %p3151_p13 = pnand %p3150_p11, %p3149_p10  ;;  %p3156_p0 = por %p3155_p8, %p3154_p2 }
  0x98   : > { %p3152_p12 = pneg %p3151_p13  ;;  %p3158_p5 = por %p3157_p3, %p3156_p0 }
  0x9a   : > { %p3159_p9 = pnand %p3158_p5, %p3152_p12 }
  0x9c   : > { %3162 = shalt.err (!%p3159_p9)
}
  0x9d   : > { %s3163_s26 = scalar_lea.vmem %s3711_s7, 4096  ;;  %s3405_s24 = smov [#allocation3]  }
  0x9e   : > { %p3164_p1 = scmp.ne.s32.totalorder %s3711_s7, %s3163_s26  ;;  %s3168_s6 = sshll.u32 %s3405_s24, 4  ;;  %s3169_s6 = int_to_ptr.vmem [resolvable:$false] %s3168_s6 }
  0x9f   : > { %s3170_s8 = scalar_lea.vmem %s3169_s6, 8192  ;;  %p3171_p13 = scmp.lt.s32.totalorder %s3711_s7, %s3169_s6 }
  0xa0   : > { %p3166_p6 = pnand %p3164_p1, %p3150_p11  ;;  %p3172_p2 = scmp.lt.s32.totalorder %s3170_s8, %s3163_s26 }
  0xa2   : > { %p3167_p10 = pneg %p3166_p6  ;;  %p3173_p8 = por %p3172_p2, %p3171_p13 }
  0xa4   : > { %p3174_p0 = pnand %p3173_p8, %p3167_p10 }
  0xa6   : > { %3177 = shalt.err (!%p3174_p0)
}
  0xa7   : > { %s3406_s3 = smov 256   ;;  %s4558_s10 = smov 128  }
  0xa8   : > { %s4559_s14 = smov 8   ;;  %s2371_s21 = sadd.s32 4294967294, %s3398_s18  }
  0xa9   : > { %2776 = dma.hbm_to_vmem [thread:$0]  (!%p3720_p4), %s3716_s11, 4096, %s3711_s7, %s3724_s23, %s3406_s3, %s4558_s10, %s4559_s14  }
  0xaa   : > { %s105_s30 = sadd.s32 1, %s3354_s29  ;;  %p4600_p11 = scmp.eq.s32.totalorder %s3601_s25, 0 }
  0xab   : > { %p112_p12 = scmp.ne.s32.totalorder %s3354_s29, %s3350_s28  ;;  %p118_p3 = scmp.ne.s32.totalorder %s3350_s28, %s3346_s27 }
  0xac   : > { %s3759_s26 = scalar_select %p4600_p11, %s3354_s29, %s105_s30  }
  0xad   : > { %p232_p5 = scmp.eq.s32.totalorder %s2371_s21, 3  ;;  %s357_s24 = sand.u32 1, %s3354_s29  }
  0xae   : > { %p4601_p9 = scmp.eq.s32.totalorder %s3398_s18, 0  ;;  %p4602_p6 = scmp.eq.s32.totalorder %s3531_s19, 0 }
  0xaf   : > { %p4604_p13 = scmp.eq.s32.totalorder %s3531_s19, 3  ;;  %p3780_p4 = por %p232_p5, %p118_p3 }
  0xb0   : > { %p114_p1 = por %p112_p12, %p4601_p9  ;;  %p3770_p10 = por %p118_p3, %p4602_p6 }
  0xb1   : > { %p3776_p2 = por %p4604_p13, %p112_p12  ;;  %s2384_s11 = sshll.u32 %s357_s24, 8 }
  0xb2   : > { %s4603_s6 = scalar_select %p3770_p10, 1, 0 }
  0xb3   : > { %s4605_s7 = scalar_select %p3776_p2, 1, 0 }
  0xb4   : > { %s4606_s25 = scalar_select %p3780_p4, 1, 0 }
  0xb5   : > { %s2473_s9 = sshll.u32 %s3394_s17, 12  ;;  %s4607_s2 = sld [smem:[#allocation31_spill]] }
  0xb6   : > { %s359_s21 = scalar_lea.vmem [#allocation8], %s2384_s11  ;;  %p4608_p8 = scmp.lt.s32.totalorder %s3398_s18, 4 }
  0xb7   : > { %s366_s30 = sshll.u32 %s359_s21, 4  ;;  %s3796_s30 = int_to_ptr.vmem [resolvable:$true] %s366_s30 }
  0xb8   : > { %p3792_p0 = pnand %p4608_p8, %p114_p1 }
  0xba   : > { %p3180_p12 = pneg %p3792_p0 }
  0xbb   : > { %s3788_s3 = scalar_lea.hbm %s4607_s2, %s2473_s9  ;;  %s3183_s23 = scalar_lea.hbm %s4607_s2, 8192 }
  0xbc   : > { %s3178_s24 = scalar_lea.hbm %s3788_s3, 4096  ;;  %p3184_p9 = scmp.lt.u32.totalorder %s3788_s3, %s4607_s2 }
  0xbd   : > { %p3179_p11 = scmp.ne.s32.totalorder %s3788_s3, %s3178_s24  ;;  %p3185_p1 = scmp.lt.u32.totalorder %s3183_s23, %s3178_s24 }
  0xbe   : > { %p3187_p13 = scmp.lt.u32.totalorder %s3178_s24, %s3788_s3 }
  0xbf   : > { %p3181_p3 = pnand %p3180_p12, %p3179_p11  ;;  %p3186_p6 = por %p3185_p1, %p3184_p9 }
  0xc1   : > { %p3182_p5 = pneg %p3181_p3  ;;  %p3188_p8 = por %p3187_p13, %p3186_p6 }
  0xc3   : > { %p3189_p4 = pnand %p3188_p8, %p3182_p5 }
  0xc5   : > { %3192 = shalt.err (!%p3189_p4)
}
  0xc6   : > { %s3193_s14 = scalar_lea.vmem %s3796_s30, 4096  ;;  %s3409_s9 = smov [#allocation8]  }
  0xc7   : > { %p3194_p11 = scmp.ne.s32.totalorder %s3796_s30, %s3193_s14  ;;  %s3198_s11 = sshll.u32 %s3409_s9, 4  ;;  %s3199_s11 = int_to_ptr.vmem [resolvable:$false] %s3198_s11 }
  0xc8   : > { %s3200_s8 = scalar_lea.vmem %s3199_s11, 8192  ;;  %p3201_p10 = scmp.lt.s32.totalorder %s3796_s30, %s3199_s11 }
  0xc9   : > { %p3196_p3 = pnand %p3194_p11, %p3180_p12  ;;  %p3202_p9 = scmp.lt.s32.totalorder %s3200_s8, %s3193_s14 }
  0xcb   : > { %p3197_p2 = pneg %p3196_p3  ;;  %p3203_p1 = por %p3202_p9, %p3201_p10 }
  0xcd   : > { %p3204_p6 = pnand %p3203_p1, %p3197_p2 }
  0xcf   : > { %3207 = shalt.err (!%p3204_p6)
}
  0xd0   : > { %s4610_s24 = smov 8   ;;  %s4611_s23 = smov 128  }
  0xd1   : > { %2782 = dma.hbm_to_vmem [thread:$0]  (!%p3792_p0), %s3788_s3, 4096, %s3796_s30, %s3635_s15, %s4611_s23, %s4611_s23, %s4610_s24  }
  0xd2   : > { %p4612_p4 = scmp.ne.s32.totalorder %s4575_s20, 0 }
  0xd3   : > { %s380_s21 = sand.u32 (!%p4612_p4), 1, %s3374_s12  }
  0xd4   : > { %378 = sbr.rel (%p4612_p4) target bundleno = 1092 (0x444), region = 48  ;;  %s2388_s9 = sshll.u32 (!%p4612_p4), %s380_s21, 8 }
  0xd5   : > { %s381_s14 = scalar_lea.sflag (!%p4612_p4), [#allocation4], %s380_s21  ;;  %s3830_s11 = scalar_lea.vmem (!%p4612_p4), [#allocation3], %s2388_s9 }
  0xdb   : > { %3321 = dma.done.wait (%p3706_p7), %s381_s14, 4096  }
  0xdc   : > { %3323 = vsyncadd (%p3706_p7), %s381_s14, 4294963200  ;;  %s4613_s10 = sld [smem:[#allocation21_spill]]  ;;  %s4614_s8 = sld [smem:[#allocation28_spill]] }
  0xdd   : > { %s389_s0 = sand.u32 1, %s3531_s19  }
  0xde   : > { %s390_s20 = scalar_lea.sflag [#allocation7], %s389_s0 }
  0xe2   : > { %s391_s15 = sand.u32 1, %s4613_s10   ;;  %p4615_p10 = scmp.ne.s32.totalorder %s4614_s8, 0 }
  0xe3   : > { %s2389_s3 = sshll.u32 %s391_s15, 7 }
  0xe4   : > { %s3838_s30 = scalar_lea.vmem [#allocation6], %s2389_s3 }
  0xe5   : > { %3325 = dma.done.wait (%p4615_p10), %s390_s20, 2048  }
  0xe6   : > { %3327 = vsyncadd (%p4615_p10), %s390_s20, 4294965248  ;;  %s3845_s24 = sand.u32 1, %s3350_s28   ;;  %p4616_p7 = scmp.ne.s32.totalorder %s4603_s6, 0 }
  0xe7   : > { %s2390_s4 = sshll.u32 %s3845_s24, 8 }
  0xe8   : > { %s3848_s23 = scalar_lea.vmem [#allocation8], %s2390_s4 }
  0xe9   : > { %3329 = dma.done.wait (%p4616_p7), %s390_s20, 4096  }
  0xea   : > { %3331 = vsyncadd (%p4616_p7), %s390_s20, 4294963200  ;;  %p4617_p2 = scmp.eq.s32.totalorder %s3531_s19, 0 }
  0xec   : > { %3333 = dma.done.wait (%p4617_p2), [#allocation10], 2048   ;;  %p4618_p0 = pmov %p4617_p2 }
  0xed   : > { %s3858_s0 = scalar_lea.vmem [#allocation12], %s2390_s4  ;;  %s3860_s21 = scalar_lea.vmem [#allocation13], %s2390_s4 }
  0xee   : > { %3335 = vsyncadd (%p4618_p0), [#allocation10], 4294965248  ;;  %s4619_s9 = sld [smem:[#allocation23_spill]] }
  0xf4   : > { %p2395_p12 = scmp.ne.s32.totalorder %s4619_s9, 0 }
  0xf5   : > { %v3410_v0 = vmov (!%p2395_p12), 0.0  }
  0xf6   : > { %468 = sbr.rel (%p2395_p12) target bundleno = 262 (0x106), region = 72  ;;  %469 = vst [vmem:[#allocation2] sm:$0xff] (!%p2395_p12), %v3410_v0  ;;  %470 = vst [vmem:[#allocation2 + $0x8] sm:$0xff] (!%p2395_p12), %v3410_v0 }
  0xf7   : > { %471 = vst [vmem:[#allocation2 + $0x10] sm:$0xff] (!%p2395_p12), %v3410_v0  ;;  %472 = vst [vmem:[#allocation2 + $0x18] sm:$0xff] (!%p2395_p12), %v3410_v0 }
  0xf8   : > { %473 = vst [vmem:[#allocation2 + $0x20] sm:$0xff] (!%p2395_p12), %v3410_v0  ;;  %474 = vst [vmem:[#allocation2 + $0x28] sm:$0xff] (!%p2395_p12), %v3410_v0 }
  0xf9   : > { %475 = vst [vmem:[#allocation2 + $0x30] sm:$0xff] (!%p2395_p12), %v3410_v0  ;;  %476 = vst [vmem:[#allocation2 + $0x38] sm:$0xff] (!%p2395_p12), %v3410_v0 }
  0xfa   : > { %477 = vst [vmem:[#allocation2 + $0x40] sm:$0xff] (!%p2395_p12), %v3410_v0  ;;  %478 = vst [vmem:[#allocation2 + $0x48] sm:$0xff] (!%p2395_p12), %v3410_v0 }
  0xfb   : > { %479 = vst [vmem:[#allocation2 + $0x50] sm:$0xff] (!%p2395_p12), %v3410_v0  ;;  %480 = vst [vmem:[#allocation2 + $0x58] sm:$0xff] (!%p2395_p12), %v3410_v0 }
  0xfc   : > { %481 = vst [vmem:[#allocation2 + $0x60] sm:$0xff] (!%p2395_p12), %v3410_v0  ;;  %482 = vst [vmem:[#allocation2 + $0x68] sm:$0xff] (!%p2395_p12), %v3410_v0 }
  0xfd   : > { %483 = vst [vmem:[#allocation2 + $0x70] sm:$0xff] %v3410_v0  ;;  %484 = vst [vmem:[#allocation2 + $0x78] sm:$0xff] %v3410_v0 }
  0xfe   : > { %485 = vst [vmem:[#allocation2 + $0x80] sm:$0xff] %v3410_v0  ;;  %486 = vst [vmem:[#allocation2 + $0x88] sm:$0xff] %v3410_v0 }
  0xff   : > { %487 = vst [vmem:[#allocation2 + $0x90] sm:$0xff] %v3410_v0  ;;  %488 = vst [vmem:[#allocation2 + $0x98] sm:$0xff] %v3410_v0 }
 0x100   : > { %489 = vst [vmem:[#allocation2 + $0xa0] sm:$0xff] %v3410_v0  ;;  %490 = vst [vmem:[#allocation2 + $0xa8] sm:$0xff] %v3410_v0 }
 0x101   : > { %491 = vst [vmem:[#allocation2 + $0xb0] sm:$0xff] %v3410_v0  ;;  %492 = vst [vmem:[#allocation2 + $0xb8] sm:$0xff] %v3410_v0 }
 0x102   : > { %493 = vst [vmem:[#allocation2 + $0xc0] sm:$0xff] %v3410_v0  ;;  %494 = vst [vmem:[#allocation2 + $0xc8] sm:$0xff] %v3410_v0 }
 0x103   : > { %495 = vst [vmem:[#allocation2 + $0xd0] sm:$0xff] %v3410_v0  ;;  %496 = vst [vmem:[#allocation2 + $0xd8] sm:$0xff] %v3410_v0 }
 0x104   : > { %497 = vst [vmem:[#allocation2 + $0xe0] sm:$0xff] %v3410_v0  ;;  %498 = vst [vmem:[#allocation2 + $0xe8] sm:$0xff] %v3410_v0 }
 0x105   : > { %499 = vst [vmem:[#allocation2 + $0xf0] sm:$0xff] %v3410_v0  ;;  %500 = vst [vmem:[#allocation2 + $0xf8] sm:$0xff] %v3410_v0 }
 0x106 PF: > { %v2918_v1 = vld [vmem:[%s3838_s30 + $0x40] sm:$0xff]   ;;  %v2920_v3 = vld [vmem:[%s3838_s30 + $0x48] sm:$0xff]   ;;  %v2922_v5 = vld [vmem:[%s3838_s30 + $0x50] sm:$0xff]   ;;  %s4620_s19 = sld [smem:[#allocation23_spill]] }
 0x107   : > { %v2919_v2 = vld [vmem:[%s3838_s30] sm:$0xff]   ;;  %2476 = vmatprep.subr.bf16.mxu0 %v2918_v1  ;;  %2732 = vmatprep.subr.bf16.mxu1 %v2918_v1  ;;  %v2921_v4 = vld [vmem:[%s3838_s30 + $0x8] sm:$0xff]   ;;  %v2923_v6 = vld [vmem:[%s3838_s30 + $0x10] sm:$0xff]  }
 0x108   : > { %2477 = vmatpush3.bf16.msra.mxu0 %v2919_v2  ;;  %2740 = vmatpush3.bf16.msra.mxu1 %v2919_v2  ;;  %v2924_v7 = vld [vmem:[%s3838_s30 + $0x58] sm:$0xff]   ;;  %v2926_v9 = vld [vmem:[%s3838_s30 + $0x60] sm:$0xff]   ;;  %v2928_v11 = vld [vmem:[%s3838_s30 + $0x68] sm:$0xff]  }
 0x109   : > { %2478 = vmatprep.subr.bf16.mxu0 %v2920_v3  ;;  %2733 = vmatprep.subr.bf16.mxu1 %v2920_v3  ;;  %v2925_v8 = vld [vmem:[%s3838_s30 + $0x18] sm:$0xff]   ;;  %v2927_v10 = vld [vmem:[%s3838_s30 + $0x20] sm:$0xff]   ;;  %v2929_v14 = vld [vmem:[%s3838_s30 + $0x28] sm:$0xff]  }
 0x10a   : > { %v2936_v12 = vld [vmem:[%s3830_s11 + $0x4] ss:$8 sps:$4 sm:$0xff]   ;;  %v2930_v15 = vld [vmem:[%s3838_s30 + $0x70] sm:$0xff]   ;;  %v2932_v17 = vld [vmem:[%s3838_s30 + $0x78] sm:$0xff]  }
 0x10b   : > { %v2939_v13 = vld [vmem:[%s3830_s11 + $0x84] ss:$8 sps:$4 sm:$0xff]   ;;  %885 = vmatprep.mubr.bf16.mxu0 %v2936_v12  ;;  %v2931_v16 = vld [vmem:[%s3838_s30 + $0x30] sm:$0xff]   ;;  %v2933_v18 = vld [vmem:[%s3838_s30 + $0x38] sm:$0xff]  }
 0x10c   : > { %2479 = vmatpush3.bf16.msra.mxu0 %v2921_v4  ;;  %2741 = vmatpush3.bf16.msra.mxu1 %v2921_v4  ;;  %v2934_v19 = vld [vmem:[%s3830_s11] ss:$8 sps:$4 sm:$0xff]   ;;  %v2940_v21 = vld [vmem:[%s3830_s11 + $0x14] ss:$8 sps:$4 sm:$0xff]   ;;  %v2944_v23 = vld [vmem:[%s3830_s11 + $0x10] ss:$8 sps:$4 sm:$0xff]  }
 0x10d   : > { %2480 = vmatprep.subr.bf16.mxu0 %v2922_v5  ;;  %2734 = vmatprep.subr.bf16.mxu1 %v2922_v5  ;;  %v2937_v20 = vld [vmem:[%s3830_s11 + $0x80] ss:$8 sps:$4 sm:$0xff]   ;;  %v2942_v22 = vld [vmem:[%s3830_s11 + $0x94] ss:$8 sps:$4 sm:$0xff]   ;;  %v2945_v24 = vld [vmem:[%s3830_s11 + $0x90] ss:$8 sps:$4 sm:$0xff]  }
 0x10e   : > { %949 = vmatprep.mubr.bf16.mxu1 %v2939_v13  ;;  %v2946_v25 = vld [vmem:[%s3830_s11 + $0x24] ss:$8 sps:$4 sm:$0xff]   ;;  %v2950_v27 = vld [vmem:[%s3830_s11 + $0x20] ss:$8 sps:$4 sm:$0xff]   ;;  %v2952_v29 = vld [vmem:[%s3830_s11 + $0x34] ss:$8 sps:$4 sm:$0xff]  }
 0x10f   : > { %v2948_v26 = vld [vmem:[%s3830_s11 + $0xa4] ss:$8 sps:$4 sm:$0xff]   ;;  %v2951_v28 = vld [vmem:[%s3830_s11 + $0xa0] ss:$8 sps:$4 sm:$0xff]   ;;  %v2954_v30 = vld [vmem:[%s3830_s11 + $0xb4] ss:$8 sps:$4 sm:$0xff]  }
 0x110   : > { %2481 = vmatpush3.bf16.msra.mxu0 %v2923_v6  ;;  %2742 = vmatpush3.bf16.msra.mxu1 %v2923_v6  ;;  %v2956_v31 = vld [vmem:[%s3830_s11 + $0x30] ss:$8 sps:$4 sm:$0xff]   ;;  %v2958_v33 = vld [vmem:[%s3830_s11 + $0x44] ss:$8 sps:$4 sm:$0xff]   ;;  %v2962_v35 = vld [vmem:[%s3830_s11 + $0x40] ss:$8 sps:$4 sm:$0xff]  }
 0x111   : > { %2482 = vmatprep.subr.bf16.mxu0 %v2924_v7  ;;  %2735 = vmatprep.subr.bf16.mxu1 %v2924_v7  ;;  %v2957_v32 = vld [vmem:[%s3830_s11 + $0xb0] ss:$8 sps:$4 sm:$0xff]   ;;  %v2960_v34 = vld [vmem:[%s3830_s11 + $0xc4] ss:$8 sps:$4 sm:$0xff]   ;;  %v2963_v36 = vld [vmem:[%s3830_s11 + $0xc0] ss:$8 sps:$4 sm:$0xff]  }
 0x112   : > { %v2964_v37 = vld [vmem:[%s3830_s11 + $0x54] ss:$8 sps:$4 sm:$0xff]   ;;  %v2968_v39 = vld [vmem:[%s3830_s11 + $0x50] ss:$8 sps:$4 sm:$0xff]   ;;  %v2970_v41 = vld [vmem:[%s3830_s11 + $0x64] ss:$8 sps:$4 sm:$0xff]  }
 0x113   : > { %v2966_v38 = vld [vmem:[%s3830_s11 + $0xd4] ss:$8 sps:$4 sm:$0xff]   ;;  %v2969_v40 = vld [vmem:[%s3830_s11 + $0xd0] ss:$8 sps:$4 sm:$0xff]   ;;  %v2972_v42 = vld [vmem:[%s3830_s11 + $0xe4] ss:$8 sps:$4 sm:$0xff]  }
 0x114   : > { %2483 = vmatpush3.bf16.msra.mxu0 %v2925_v8  ;;  %2743 = vmatpush3.bf16.msra.mxu1 %v2925_v8  ;;  %v2974_v43 = vld [vmem:[%s3830_s11 + $0x60] ss:$8 sps:$4 sm:$0xff]   ;;  %v2976_v45 = vld [vmem:[%s3830_s11 + $0x74] ss:$8 sps:$4 sm:$0xff]   ;;  %v2980_v47 = vld [vmem:[%s3830_s11 + $0x70] ss:$8 sps:$4 sm:$0xff]  }
 0x115   : > { %2484 = vmatprep.subr.bf16.mxu0 %v2926_v9  ;;  %2736 = vmatprep.subr.bf16.mxu1 %v2926_v9  ;;  %v2975_v44 = vld [vmem:[%s3830_s11 + $0xe0] ss:$8 sps:$4 sm:$0xff]   ;;  %v2978_v46 = vld [vmem:[%s3830_s11 + $0xf4] ss:$8 sps:$4 sm:$0xff]   ;;  %v2981_v48 = vld [vmem:[%s3830_s11 + $0xf0] ss:$8 sps:$4 sm:$0xff]  }
 0x116   : > { %v501_v51 = vld [vmem:[#allocation2] sm:$0xff]  ;;  %v502_v59 = vld [vmem:[#allocation2 + $0x8] sm:$0xff]  ;;  %v503_v7 = vld [vmem:[#allocation2 + $0x10] sm:$0xff]  ;;  %p2444_p5 = scmp.ne.s32.totalorder %s4620_s19, 1 }
 0x117   : > { %v517_v53 = vld [vmem:[#allocation2 + $0x80] sm:$0xff]  ;;  %v518_v61 = vld [vmem:[#allocation2 + $0x88] sm:$0xff]  ;;  %v519_v9 = vld [vmem:[#allocation2 + $0x90] sm:$0xff]  ;;  %s4621_s11 = sld [smem:[#allocation33_spill]] (!%p2444_p5)  ;;  %s4622_s15 = sld [smem:[#allocation35_spill]] (!%p2444_p5) }
 0x118   : > { %2485 = vmatpush3.bf16.msra.mxu0 %v2927_v10  ;;  %2744 = vmatpush3.bf16.msra.mxu1 %v2927_v10 }
 0x119   : > { %2486 = vmatprep.subr.bf16.mxu0 %v2928_v11  ;;  %2737 = vmatprep.subr.bf16.mxu1 %v2928_v11 }
 0x11c   : > { %2487 = vmatpush3.bf16.msra.mxu0 %v2929_v14  ;;  %2745 = vmatpush3.bf16.msra.mxu1 %v2929_v14 }
 0x11d   : > { %2488 = vmatprep.subr.bf16.mxu0 %v2930_v15  ;;  %2738 = vmatprep.subr.bf16.mxu1 %v2930_v15  ;;  %v504_v15 = vld [vmem:[#allocation2 + $0x18] sm:$0xff] }
 0x120   : > { %2489 = vmatpush3.bf16.msra.mxu0 %v2931_v16  ;;  %2746 = vmatpush3.bf16.msra.mxu1 %v2931_v16 }
 0x121   : > { %2490 = vmatprep.subr.bf16.mxu0 %v2932_v17  ;;  %2739 = vmatprep.subr.bf16.mxu1 %v2932_v17  ;;  %v520_v17 = vld [vmem:[#allocation2 + $0x98] sm:$0xff] }
 0x124   : > { %2491 = vmatpush3.bf16.msra.mxu0 %v2933_v18  ;;  %2747 = vmatpush3.bf16.msra.mxu1 %v2933_v18 }
 0x127   : > { %886 = vmatmul.mubr.bf16.vlgmr.msra.gmra.mrb[0].mxu0 %v2934_v19  ;;  %950 = vmatmul.mubr.bf16.vlgmr.msra.gmra.mrb[0].mxu1 %v2937_v20 }
 0x128   : > { %893 = vmatprep.mubr.bf16.mxu0 %v2940_v21  ;;  %957 = vmatprep.mubr.bf16.mxu1 %v2942_v22 }
 0x12f   : > { %894 = vmatmul.mubr.bf16.gmra.mrb[4].mxu0 %v2944_v23  ;;  %958 = vmatmul.mubr.bf16.gmra.mrb[4].mxu1 %v2945_v24 }
 0x130   : > { %901 = vmatprep.mubr.bf16.mxu0 %v2946_v25  ;;  %965 = vmatprep.mubr.bf16.mxu1 %v2948_v26 }
 0x137   : > { %902 = vmatmul.mubr.bf16.gmra.mrb[8].mxu0 %v2950_v27  ;;  %966 = vmatmul.mubr.bf16.gmra.mrb[8].mxu1 %v2951_v28  ;;  %v505_v27 = vld [vmem:[#allocation2 + $0x20] sm:$0xff] }
 0x138   : > { %909 = vmatprep.mubr.bf16.mxu0 %v2952_v29  ;;  %973 = vmatprep.mubr.bf16.mxu1 %v2954_v30  ;;  %v521_v29 = vld [vmem:[#allocation2 + $0xa0] sm:$0xff] }
 0x13f   : > { %910 = vmatmul.mubr.bf16.gmra.mrb[12].mxu0 %v2956_v31  ;;  %974 = vmatmul.mubr.bf16.gmra.mrb[12].mxu1 %v2957_v32 }
 0x140   : > { %917 = vmatprep.mubr.bf16.mxu0 %v2958_v33  ;;  %981 = vmatprep.mubr.bf16.mxu1 %v2960_v34 }
 0x147   : > { %918 = vmatmul.mubr.bf16.gmra.mrb[16].mxu0 %v2962_v35  ;;  %982 = vmatmul.mubr.bf16.gmra.mrb[16].mxu1 %v2963_v36  ;;  %v506_v35 = vld [vmem:[#allocation2 + $0x28] sm:$0xff] }
 0x148   : > { %925 = vmatprep.mubr.bf16.mxu0 %v2964_v37  ;;  %989 = vmatprep.mubr.bf16.mxu1 %v2966_v38  ;;  %v522_v37 = vld [vmem:[#allocation2 + $0xa8] sm:$0xff] }
 0x14f   : > { %926 = vmatmul.mubr.bf16.gmra.mrb[20].mxu0 %v2968_v39  ;;  %990 = vmatmul.mubr.bf16.gmra.mrb[20].mxu1 %v2969_v40 }
 0x150   : > { %933 = vmatprep.mubr.bf16.mxu0 %v2970_v41  ;;  %997 = vmatprep.mubr.bf16.mxu1 %v2972_v42 }
 0x157   : > { %934 = vmatmul.mubr.bf16.gmra.mrb[24].mxu0 %v2974_v43  ;;  %998 = vmatmul.mubr.bf16.gmra.mrb[24].mxu1 %v2975_v44 }
 0x158   : > { %941 = vmatprep.mubr.bf16.mxu0 %v2976_v45  ;;  %1005 = vmatprep.mubr.bf16.mxu1 %v2978_v46 }
 0x15f   : > { %942 = vmatmul.mubr.bf16.gmra.mrb[28].mxu0 %v2980_v47  ;;  %1006 = vmatmul.mubr.bf16.gmra.mrb[28].mxu1 %v2981_v48  ;;  %v507_v47 = vld [vmem:[#allocation2 + $0x30] sm:$0xff] }
 0x1fa   : > { %v2492_v49 = vpop.f32.mrb[0].mxu0  ;;  %v2540_v50 = vpop.f32.mrb[0].mxu1 }
 0x1fb   : > { %v2493_v52 = vpop.f32.mrb[1].mxu0  ;;  %v2541_v54 = vpop.f32.mrb[1].mxu1 }
 0x1fc   : > { %v2494_v55 = vadd.f32 %v2493_v52, %v2492_v49  ;;  %v2542_v56 = vadd.f32 %v2541_v54, %v2540_v50  ;;  %v2495_v57 = vpop.f32.mrb[2].mxu0  ;;  %v2543_v58 = vpop.f32.mrb[2].mxu1  ;;  %v523_v49 = vld [vmem:[#allocation2 + $0xb0] sm:$0xff] }
 0x1fd   : > { %v2496_v60 = vpop.f32.mrb[3].mxu0  ;;  %v2544_v62 = vpop.f32.mrb[3].mxu1 }
 0x1fe   : > { %v1014_v63 = vadd.f32 %v2494_v55, %v501_v51  ;;  %v1030_v0 = vadd.f32 %v2542_v56, %v517_v53  ;;  %v2497_v1 = vadd.f32 %v2496_v60, %v2495_v57  ;;  %v2545_v2 = vadd.f32 %v2544_v62, %v2543_v58  ;;  %v508_v55 = vld [vmem:[#allocation2 + $0x38] sm:$0xff] }
 0x1ff   : > { %v524_v57 = vld [vmem:[#allocation2 + $0xb8] sm:$0xff] }
 0x200   : > { %1046 = vst [vmem:[#allocation2] sm:$0xff] %v1014_v63  ;;  %1062 = vst [vmem:[#allocation2 + $0x80] sm:$0xff] %v1030_v0  ;;  %v1015_v3 = vadd.f32 %v2497_v1, %v502_v59  ;;  %v1031_v4 = vadd.f32 %v2545_v2, %v518_v61 }
 0x202   : > { %1047 = vst [vmem:[#allocation2 + $0x8] sm:$0xff] %v1015_v3  ;;  %1063 = vst [vmem:[#allocation2 + $0x88] sm:$0xff] %v1031_v4  ;;  %v2498_v5 = vpop.f32.mrb[4].mxu0  ;;  %v2546_v6 = vpop.f32.mrb[4].mxu1  ;;  %v509_v3 = vld [vmem:[#allocation2 + $0x40] sm:$0xff] }
 0x203   : > { %v2499_v8 = vpop.f32.mrb[5].mxu0  ;;  %v2547_v10 = vpop.f32.mrb[5].mxu1 }
 0x204   : > { %v2500_v11 = vadd.f32 %v2499_v8, %v2498_v5  ;;  %v2548_v12 = vadd.f32 %v2547_v10, %v2546_v6  ;;  %v2501_v13 = vpop.f32.mrb[6].mxu0  ;;  %v2549_v14 = vpop.f32.mrb[6].mxu1  ;;  %v525_v5 = vld [vmem:[#allocation2 + $0xc0] sm:$0xff] }
 0x205   : > { %v2502_v16 = vpop.f32.mrb[7].mxu0  ;;  %v2550_v18 = vpop.f32.mrb[7].mxu1 }
 0x206   : > { %v1016_v19 = vadd.f32 %v2500_v11, %v503_v7  ;;  %v1032_v20 = vadd.f32 %v2548_v12, %v519_v9  ;;  %v2503_v21 = vadd.f32 %v2502_v16, %v2501_v13  ;;  %v2551_v22 = vadd.f32 %v2550_v18, %v2549_v14  ;;  %v510_v11 = vld [vmem:[#allocation2 + $0x48] sm:$0xff] }
 0x207   : > { %v526_v13 = vld [vmem:[#allocation2 + $0xc8] sm:$0xff] }
 0x208   : > { %1048 = vst [vmem:[#allocation2 + $0x10] sm:$0xff] %v1016_v19  ;;  %1064 = vst [vmem:[#allocation2 + $0x90] sm:$0xff] %v1032_v20  ;;  %v1017_v23 = vadd.f32 %v2503_v21, %v504_v15  ;;  %v1033_v24 = vadd.f32 %v2551_v22, %v520_v17 }
 0x20a   : > { %1049 = vst [vmem:[#allocation2 + $0x18] sm:$0xff] %v1017_v23  ;;  %1065 = vst [vmem:[#allocation2 + $0x98] sm:$0xff] %v1033_v24  ;;  %v2504_v25 = vpop.f32.mrb[8].mxu0  ;;  %v2552_v26 = vpop.f32.mrb[8].mxu1  ;;  %v511_v23 = vld [vmem:[#allocation2 + $0x50] sm:$0xff] }
 0x20b   : > { %v2505_v28 = vpop.f32.mrb[9].mxu0  ;;  %v2553_v30 = vpop.f32.mrb[9].mxu1 }
 0x20c   : > { %v2506_v31 = vadd.f32 %v2505_v28, %v2504_v25  ;;  %v2554_v32 = vadd.f32 %v2553_v30, %v2552_v26  ;;  %v2507_v33 = vpop.f32.mrb[10].mxu0  ;;  %v2555_v34 = vpop.f32.mrb[10].mxu1  ;;  %v527_v25 = vld [vmem:[#allocation2 + $0xd0] sm:$0xff] }
 0x20d   : > { %v2508_v36 = vpop.f32.mrb[11].mxu0  ;;  %v2556_v38 = vpop.f32.mrb[11].mxu1 }
 0x20e   : > { %v1018_v39 = vadd.f32 %v2506_v31, %v505_v27  ;;  %v1034_v40 = vadd.f32 %v2554_v32, %v521_v29  ;;  %v2509_v41 = vadd.f32 %v2508_v36, %v2507_v33  ;;  %v2557_v42 = vadd.f32 %v2556_v38, %v2555_v34  ;;  %v512_v31 = vld [vmem:[#allocation2 + $0x58] sm:$0xff] }
 0x20f   : > { %v528_v33 = vld [vmem:[#allocation2 + $0xd8] sm:$0xff] }
 0x210   : > { %1050 = vst [vmem:[#allocation2 + $0x20] sm:$0xff] %v1018_v39  ;;  %1066 = vst [vmem:[#allocation2 + $0xa0] sm:$0xff] %v1034_v40  ;;  %v1019_v43 = vadd.f32 %v2509_v41, %v506_v35  ;;  %v1035_v44 = vadd.f32 %v2557_v42, %v522_v37 }
 0x212   : > { %1051 = vst [vmem:[#allocation2 + $0x28] sm:$0xff] %v1019_v43  ;;  %1067 = vst [vmem:[#allocation2 + $0xa8] sm:$0xff] %v1035_v44  ;;  %v2510_v45 = vpop.f32.mrb[12].mxu0  ;;  %v2558_v46 = vpop.f32.mrb[12].mxu1  ;;  %v513_v43 = vld [vmem:[#allocation2 + $0x60] sm:$0xff] }
 0x213   : > { %v2511_v48 = vpop.f32.mrb[13].mxu0  ;;  %v2559_v50 = vpop.f32.mrb[13].mxu1 }
 0x214   : > { %v2512_v51 = vadd.f32 %v2511_v48, %v2510_v45  ;;  %v2560_v52 = vadd.f32 %v2559_v50, %v2558_v46  ;;  %v2513_v53 = vpop.f32.mrb[14].mxu0  ;;  %v2561_v54 = vpop.f32.mrb[14].mxu1  ;;  %v529_v45 = vld [vmem:[#allocation2 + $0xe0] sm:$0xff] }
 0x215   : > { %v2514_v56 = vpop.f32.mrb[15].mxu0  ;;  %v2562_v58 = vpop.f32.mrb[15].mxu1 }
 0x216   : > { %v1020_v59 = vadd.f32 %v2512_v51, %v507_v47  ;;  %v1036_v60 = vadd.f32 %v2560_v52, %v523_v49  ;;  %v2515_v61 = vadd.f32 %v2514_v56, %v2513_v53  ;;  %v2563_v62 = vadd.f32 %v2562_v58, %v2561_v54  ;;  %v514_v51 = vld [vmem:[#allocation2 + $0x68] sm:$0xff] }
 0x217   : > { %v530_v53 = vld [vmem:[#allocation2 + $0xe8] sm:$0xff] }
 0x218   : > { %1052 = vst [vmem:[#allocation2 + $0x30] sm:$0xff] %v1020_v59  ;;  %1068 = vst [vmem:[#allocation2 + $0xb0] sm:$0xff] %v1036_v60  ;;  %v1021_v63 = vadd.f32 %v2515_v61, %v508_v55  ;;  %v1037_v0 = vadd.f32 %v2563_v62, %v524_v57 }
 0x21a   : > { %1053 = vst [vmem:[#allocation2 + $0x38] sm:$0xff] %v1021_v63  ;;  %1069 = vst [vmem:[#allocation2 + $0xb8] sm:$0xff] %v1037_v0  ;;  %v2516_v1 = vpop.f32.mrb[16].mxu0  ;;  %v2564_v2 = vpop.f32.mrb[16].mxu1  ;;  %v515_v63 = vld [vmem:[#allocation2 + $0x70] sm:$0xff] }
 0x21b   : > { %v2517_v4 = vpop.f32.mrb[17].mxu0  ;;  %v2565_v6 = vpop.f32.mrb[17].mxu1 }
 0x21c   : > { %v2518_v7 = vadd.f32 %v2517_v4, %v2516_v1  ;;  %v2566_v8 = vadd.f32 %v2565_v6, %v2564_v2  ;;  %v2519_v9 = vpop.f32.mrb[18].mxu0  ;;  %v2567_v10 = vpop.f32.mrb[18].mxu1  ;;  %v531_v1 = vld [vmem:[#allocation2 + $0xf0] sm:$0xff] }
 0x21d   : > { %v2520_v12 = vpop.f32.mrb[19].mxu0  ;;  %v2568_v14 = vpop.f32.mrb[19].mxu1 }
 0x21e   : > { %v1022_v15 = vadd.f32 %v2518_v7, %v509_v3  ;;  %v1038_v16 = vadd.f32 %v2566_v8, %v525_v5  ;;  %v2521_v17 = vadd.f32 %v2520_v12, %v2519_v9  ;;  %v2569_v18 = vadd.f32 %v2568_v14, %v2567_v10  ;;  %v516_v7 = vld [vmem:[#allocation2 + $0x78] sm:$0xff] }
 0x21f   : > { %v532_v9 = vld [vmem:[#allocation2 + $0xf8] sm:$0xff] }
 0x220   : > { %1054 = vst [vmem:[#allocation2 + $0x40] sm:$0xff] %v1022_v15  ;;  %1070 = vst [vmem:[#allocation2 + $0xc0] sm:$0xff] %v1038_v16  ;;  %v1023_v19 = vadd.f32 %v2521_v17, %v510_v11  ;;  %v1039_v20 = vadd.f32 %v2569_v18, %v526_v13  ;;  %v2982_v17 = vld [vmem:[#allocation9] sm:$0xff] (!%p2444_p5)  }
 0x221   : > { %v2983_v18 = vld [vmem:[#allocation11] sm:$0xff] (!%p2444_p5)   ;;  %2636 = vmatprep.subr.bf16.mxu0 (!%p2444_p5), %v2982_v17 }
 0x222   : > { %1055 = vst [vmem:[#allocation2 + $0x48] sm:$0xff] %v1023_v19  ;;  %1071 = vst [vmem:[#allocation2 + $0xc8] sm:$0xff] %v1039_v20  ;;  %v2522_v21 = vpop.f32.mrb[20].mxu0  ;;  %v2570_v22 = vpop.f32.mrb[20].mxu1  ;;  %v2984_v19 = vld [vmem:[#allocation9 + $0x8] sm:$0xff] (!%p2444_p5)   ;;  %2684 = vmatprep.subr.bf16.mxu1 (!%p2444_p5), %v2983_v18  ;;  %2637 = vmatpush3.bf16.msra.mxu0 (!%p2444_p5), %v2982_v17 }
 0x223   : > { %v2523_v24 = vpop.f32.mrb[21].mxu0  ;;  %v2571_v26 = vpop.f32.mrb[21].mxu1  ;;  %v2985_v20 = vld [vmem:[#allocation11 + $0x8] sm:$0xff] (!%p2444_p5)   ;;  %2685 = vmatpush3.bf16.msra.mxu1 (!%p2444_p5), %v2983_v18  ;;  %2638 = vmatprep.subr.bf16.mxu0 (!%p2444_p5), %v2984_v19 }
 0x224   : > { %v2524_v27 = vadd.f32 %v2523_v24, %v2522_v21  ;;  %v2572_v28 = vadd.f32 %v2571_v26, %v2570_v22  ;;  %v2525_v29 = vpop.f32.mrb[22].mxu0  ;;  %v2573_v30 = vpop.f32.mrb[22].mxu1  ;;  %v2986_v21 = vld [vmem:[#allocation9 + $0x10] sm:$0xff] (!%p2444_p5)   ;;  %2686 = vmatprep.subr.bf16.mxu1 (!%p2444_p5), %v2985_v20  ;;  %v2989_v24 = vld [vmem:[#allocation11 + $0x18] sm:$0xff] (!%p2444_p5)   ;;  %v2991_v26 = vld [vmem:[#allocation11 + $0x20] sm:$0xff] (!%p2444_p5)  }
 0x225   : > { %v2526_v32 = vpop.f32.mrb[23].mxu0  ;;  %v2574_v34 = vpop.f32.mrb[23].mxu1  ;;  %v2987_v22 = vld [vmem:[#allocation11 + $0x10] sm:$0xff] (!%p2444_p5)  }
 0x226   : > { %v1024_v35 = vadd.f32 %v2524_v27, %v511_v23  ;;  %v1040_v36 = vadd.f32 %v2572_v28, %v527_v25  ;;  %v2527_v37 = vadd.f32 %v2526_v32, %v2525_v29  ;;  %v2575_v38 = vadd.f32 %v2574_v34, %v2573_v30  ;;  %2639 = vmatpush3.bf16.msra.mxu0 (!%p2444_p5), %v2984_v19  ;;  %v2988_v23 = vld [vmem:[#allocation9 + $0x18] sm:$0xff] (!%p2444_p5)   ;;  %v2990_v25 = vld [vmem:[#allocation9 + $0x20] sm:$0xff] (!%p2444_p5)   ;;  %v2992_v27 = vld [vmem:[#allocation9 + $0x28] sm:$0xff] (!%p2444_p5)  }
 0x227   : > { %2687 = vmatpush3.bf16.msra.mxu1 (!%p2444_p5), %v2985_v20  ;;  %2640 = vmatprep.subr.bf16.mxu0 (!%p2444_p5), %v2986_v21  ;;  %v1082_v28 = vld [vmem:[#allocation2] sm:$0xff] (!%p2444_p5)  ;;  %v1083_v29 = vld [vmem:[#allocation2 + $0x8] sm:$0xff] (!%p2444_p5) }
 0x228   : > { %1056 = vst [vmem:[#allocation2 + $0x50] sm:$0xff] %v1024_v35  ;;  %1072 = vst [vmem:[#allocation2 + $0xd0] sm:$0xff] %v1040_v36  ;;  %v1025_v39 = vadd.f32 %v2527_v37, %v512_v31  ;;  %v1041_v40 = vadd.f32 %v2575_v38, %v528_v33  ;;  %2688 = vmatprep.subr.bf16.mxu1 (!%p2444_p5), %v2987_v22  ;;  %v1114_v30 = vld [vmem:[%s3848_s23] sm:$0xff] (!%p2444_p5)  ;;  %v2993_v31 = vld [vmem:[#allocation11 + $0x28] sm:$0xff] (!%p2444_p5)   ;;  %v1146_v32 = vpack.c.bf16 (!%p2444_p5), %v1083_v29, %v1082_v28 }
 0x229   : > { %v1115_v33 = vld [vmem:[%s3848_s23 + $0x8] sm:$0xff] (!%p2444_p5)  ;;  %v1490_v34 = vmul.f32 (!%p2444_p5), %v1114_v30, %v1082_v28  ;;  %v2994_v36 = vld [vmem:[#allocation9 + $0x30] sm:$0xff] (!%p2444_p5)   ;;  %v1129_v28 = vld [vmem:[%s3848_s23 + $0x78] sm:$0xff] (!%p2444_p5) }
 0x22a   : > { %1057 = vst [vmem:[#allocation2 + $0x58] sm:$0xff] %v1025_v39  ;;  %1073 = vst [vmem:[#allocation2 + $0xd8] sm:$0xff] %v1041_v40  ;;  %v2528_v41 = vpop.f32.mrb[24].mxu0  ;;  %v2576_v42 = vpop.f32.mrb[24].mxu1  ;;  %2641 = vmatpush3.bf16.msra.mxu0 (!%p2444_p5), %v2986_v21  ;;  %v1491_v35 = vmul.f32 (!%p2444_p5), %v1115_v33, %v1083_v29  ;;  %2652 = vmatprep.mubr.bf16.mxu0 (!%p2444_p5), %v1146_v32  ;;  %v2995_v38 = vld [vmem:[#allocation11 + $0x30] sm:$0xff] (!%p2444_p5)   ;;  %v2996_v39 = vld [vmem:[#allocation9 + $0x38] sm:$0xff] (!%p2444_p5)  }
 0x22b   : > { %v2529_v44 = vpop.f32.mrb[25].mxu0  ;;  %v2577_v46 = vpop.f32.mrb[25].mxu1  ;;  %2689 = vmatpush3.bf16.msra.mxu1 (!%p2444_p5), %v2987_v22  ;;  %2642 = vmatprep.subr.bf16.mxu0 (!%p2444_p5), %v2988_v23  ;;  %v2997_v40 = vld [vmem:[#allocation11 + $0x38] sm:$0xff] (!%p2444_p5)   ;;  %v1098_v29 = vld [vmem:[#allocation2 + $0x80] sm:$0xff] (!%p2444_p5)  ;;  %v1099_v30 = vld [vmem:[#allocation2 + $0x88] sm:$0xff] (!%p2444_p5) }
 0x22c   : > { %v2530_v47 = vadd.f32 %v2529_v44, %v2528_v41  ;;  %v2578_v48 = vadd.f32 %v2577_v46, %v2576_v42  ;;  %v2531_v49 = vpop.f32.mrb[26].mxu0  ;;  %v2579_v50 = vpop.f32.mrb[26].mxu1  ;;  %2690 = vmatprep.subr.bf16.mxu1 (!%p2444_p5), %v2989_v24  ;;  %v1522_v37 = vpack.c.bf16 (!%p2444_p5), %v1491_v35, %v1490_v34  ;;  %v1084_v41 = vld [vmem:[#allocation2 + $0x10] sm:$0xff] (!%p2444_p5)  ;;  %v1085_v42 = vld [vmem:[#allocation2 + $0x18] sm:$0xff] (!%p2444_p5)  ;;  %v1087_v46 = vld [vmem:[#allocation2 + $0x28] sm:$0xff] (!%p2444_p5) }
 0x22d   : > { %v2532_v52 = vpop.f32.mrb[27].mxu0  ;;  %v2580_v54 = vpop.f32.mrb[27].mxu1  ;;  %v1117_v44 = vld [vmem:[%s3848_s23 + $0x18] sm:$0xff] (!%p2444_p5)  ;;  %v1131_v32 = vld [vmem:[%s3848_s23 + $0x88] sm:$0xff] (!%p2444_p5) }
 0x22e   : > { %v1026_v55 = vadd.f32 %v2530_v47, %v513_v43  ;;  %v1042_v56 = vadd.f32 %v2578_v48, %v529_v45  ;;  %v2533_v57 = vadd.f32 %v2532_v52, %v2531_v49  ;;  %v2581_v58 = vadd.f32 %v2580_v54, %v2579_v50  ;;  %2643 = vmatpush3.bf16.msra.mxu0 (!%p2444_p5), %v2988_v23  ;;  %v1116_v43 = vld [vmem:[%s3848_s23 + $0x10] sm:$0xff] (!%p2444_p5)  ;;  %v1086_v45 = vld [vmem:[#allocation2 + $0x20] sm:$0xff] (!%p2444_p5)  ;;  %v1119_v48 = vld [vmem:[%s3848_s23 + $0x28] sm:$0xff] (!%p2444_p5) }
 0x22f   : > { %2691 = vmatpush3.bf16.msra.mxu1 (!%p2444_p5), %v2989_v24  ;;  %2644 = vmatprep.subr.bf16.mxu0 (!%p2444_p5), %v2990_v25  ;;  %v1118_v47 = vld [vmem:[%s3848_s23 + $0x20] sm:$0xff] (!%p2444_p5)  ;;  %v1492_v49 = vmul.f32 (!%p2444_p5), %v1116_v43, %v1084_v41  ;;  %v1493_v50 = vmul.f32 (!%p2444_p5), %v1117_v44, %v1085_v42  ;;  %v1495_v52 = vmul.f32 (!%p2444_p5), %v1119_v48, %v1087_v46  ;;  %v1132_v43 = vld [vmem:[%s3848_s23 + $0x90] sm:$0xff] (!%p2444_p5)  ;;  %v1133_v44 = vld [vmem:[%s3848_s23 + $0x98] sm:$0xff] (!%p2444_p5) }
 0x230   : > { %1058 = vst [vmem:[#allocation2 + $0x60] sm:$0xff] %v1026_v55  ;;  %1074 = vst [vmem:[#allocation2 + $0xe0] sm:$0xff] %v1042_v56  ;;  %v1027_v59 = vadd.f32 %v2533_v57, %v514_v51  ;;  %v1043_v60 = vadd.f32 %v2581_v58, %v530_v53  ;;  %2692 = vmatprep.subr.bf16.mxu1 (!%p2444_p5), %v2991_v26  ;;  %2700 = vmatprep.mubr.bf16.mxu1 (!%p2444_p5), %v1522_v37  ;;  %v1088_v56 = vld [vmem:[#allocation2 + $0x30] sm:$0xff] (!%p2444_p5)  ;;  %v1089_v57 = vld [vmem:[#allocation2 + $0x38] sm:$0xff] (!%p2444_p5) }
 0x231   : > { %v1494_v51 = vmul.f32 (!%p2444_p5), %v1118_v47, %v1086_v45  ;;  %v1147_v53 = vpack.c.bf16 (!%p2444_p5), %v1085_v42, %v1084_v41  ;;  %v1523_v54 = vpack.c.bf16 (!%p2444_p5), %v1493_v50, %v1492_v49  ;;  %v1148_v55 = vpack.c.bf16 (!%p2444_p5), %v1087_v46, %v1086_v45  ;;  %v1101_v41 = vld [vmem:[#allocation2 + $0x98] sm:$0xff] (!%p2444_p5)  ;;  %v1102_v45 = vld [vmem:[#allocation2 + $0xa0] sm:$0xff] (!%p2444_p5)  ;;  %v1103_v46 = vld [vmem:[#allocation2 + $0xa8] sm:$0xff] (!%p2444_p5) }
 0x232   : > { %1059 = vst [vmem:[#allocation2 + $0x68] sm:$0xff] %v1027_v59  ;;  %1075 = vst [vmem:[#allocation2 + $0xe8] sm:$0xff] %v1043_v60  ;;  %v2534_v61 = vpop.f32.mrb[28].mxu0  ;;  %v2582_v62 = vpop.f32.mrb[28].mxu1  ;;  %2645 = vmatpush3.bf16.msra.mxu0 (!%p2444_p5), %v2990_v25  ;;  %v1120_v59 = vld [vmem:[%s3848_s23 + $0x30] sm:$0xff] (!%p2444_p5)  ;;  %v1121_v60 = vld [vmem:[%s3848_s23 + $0x38] sm:$0xff] (!%p2444_p5)  ;;  %v1509_v50 = vmul.f32 (!%p2444_p5), %v1133_v44, %v1101_v41 }
 0x233   : > { %v2535_v0 = vpop.f32.mrb[29].mxu0  ;;  %v2583_v2 = vpop.f32.mrb[29].mxu1  ;;  %2693 = vmatpush3.bf16.msra.mxu1 (!%p2444_p5), %v2991_v26  ;;  %2646 = vmatprep.subr.bf16.mxu0 (!%p2444_p5), %v2992_v27  ;;  %v1524_v58 = vpack.c.bf16 (!%p2444_p5), %v1495_v52, %v1494_v51  ;;  %v1134_v47 = vld [vmem:[%s3848_s23 + $0xa0] sm:$0xff] (!%p2444_p5)  ;;  %v1135_v48 = vld [vmem:[%s3848_s23 + $0xa8] sm:$0xff] (!%p2444_p5) }
 0x234   : > { %v2536_v3 = vadd.f32 %v2535_v0, %v2534_v61  ;;  %v2584_v4 = vadd.f32 %v2583_v2, %v2582_v62  ;;  %v2537_v5 = vpop.f32.mrb[30].mxu0  ;;  %v2585_v6 = vpop.f32.mrb[30].mxu1  ;;  %1081 = sbr.rel (%p2444_p5) target bundleno = 1040 (0x410), region = 76  ;;  %2694 = vmatprep.subr.bf16.mxu1 (!%p2444_p5), %v2993_v31  ;;  %v1090_v61 = vld [vmem:[#allocation2 + $0x40] sm:$0xff] (!%p2444_p5)  ;;  %v1091_v62 = vld [vmem:[#allocation2 + $0x48] sm:$0xff] (!%p2444_p5)  ;;  %v1497_v2 = vmul.f32 (!%p2444_p5), %v1121_v60, %v1089_v57  ;;  %v1510_v51 = vmul.f32 (!%p2444_p5), %v1134_v47, %v1102_v45  ;;  %v1137_v60 = vld [vmem:[%s3848_s23 + $0xb8] sm:$0xff] (!%p2444_p5) }
 0x235   : > { %v2538_v8 = vpop.f32.mrb[31].mxu0  ;;  %v2586_v10 = vpop.f32.mrb[31].mxu1  ;;  %v1123_v0 = vld [vmem:[%s3848_s23 + $0x48] sm:$0xff] (!%p2444_p5)  ;;  %v1511_v52 = vmul.f32 (!%p2444_p5), %v1135_v48, %v1103_v46 }
 0x236   : > { %v1028_v11 = vadd.f32 %v2536_v3, %v515_v63  ;;  %v1044_v12 = vadd.f32 %v2584_v4, %v531_v1  ;;  %v2539_v13 = vadd.f32 %v2538_v8, %v2537_v5  ;;  %v2587_v14 = vadd.f32 %v2586_v10, %v2585_v6  ;;  %2647 = vmatpush3.bf16.msra.mxu0 (!%p2444_p5), %v2992_v27  ;;  %v1122_v63 = vld [vmem:[%s3848_s23 + $0x40] sm:$0xff] (!%p2444_p5)  ;;  %v1092_v8 = vld [vmem:[#allocation2 + $0x50] sm:$0xff] (!%p2444_p5) }
 0x237   : > { %2695 = vmatpush3.bf16.msra.mxu1 (!%p2444_p5), %v2993_v31  ;;  %2648 = vmatprep.subr.bf16.mxu0 (!%p2444_p5), %v2994_v36  ;;  %v1496_v1 = vmul.f32 (!%p2444_p5), %v1120_v59, %v1088_v56  ;;  %v1498_v3 = vmul.f32 (!%p2444_p5), %v1122_v63, %v1090_v61  ;;  %v1499_v4 = vmul.f32 (!%p2444_p5), %v1123_v0, %v1091_v62  ;;  %v1128_v27 = vld [vmem:[%s3848_s23 + $0x70] sm:$0xff] (!%p2444_p5)  ;;  %v1130_v31 = vld [vmem:[%s3848_s23 + $0x80] sm:$0xff] (!%p2444_p5)  ;;  %v1139_v0 = vld [vmem:[%s3848_s23 + $0xc8] sm:$0xff] (!%p2444_p5) }
 0x238   : > { %1060 = vst [vmem:[#allocation2 + $0x70] sm:$0xff] %v1028_v11  ;;  %1076 = vst [vmem:[#allocation2 + $0xf0] sm:$0xff] %v1044_v12  ;;  %v1029_v15 = vadd.f32 %v2539_v13, %v516_v7  ;;  %v1045_v16 = vadd.f32 %v2587_v14, %v532_v9  ;;  %2696 = vmatprep.subr.bf16.mxu1 (!%p2444_p5), %v2995_v38  ;;  %v1149_v5 = vpack.c.bf16 (!%p2444_p5), %v1089_v57, %v1088_v56  ;;  %v1093_v9 = vld [vmem:[#allocation2 + $0x58] sm:$0xff] (!%p2444_p5)  ;;  %v1124_v11 = vld [vmem:[%s3848_s23 + $0x50] sm:$0xff] (!%p2444_p5) }
 0x239   : > { %v1525_v6 = vpack.c.bf16 (!%p2444_p5), %v1497_v2, %v1496_v1  ;;  %v1150_v7 = vpack.c.bf16 (!%p2444_p5), %v1091_v62, %v1090_v61  ;;  %v1526_v10 = vpack.c.bf16 (!%p2444_p5), %v1499_v4, %v1498_v3  ;;  %v1125_v12 = vld [vmem:[%s3848_s23 + $0x58] sm:$0xff] (!%p2444_p5)  ;;  %v1094_v13 = vld [vmem:[#allocation2 + $0x60] sm:$0xff] (!%p2444_p5)  ;;  %v1095_v14 = vld [vmem:[#allocation2 + $0x68] sm:$0xff] (!%p2444_p5)  ;;  %v1500_v17 = vmul.f32 (!%p2444_p5), %v1124_v11, %v1092_v8 }
 0x23a   : > { %1061 = vst [vmem:[#allocation2 + $0x78] sm:$0xff] %v1029_v15  ;;  %1077 = vst [vmem:[#allocation2 + $0xf8] sm:$0xff] %v1045_v16  ;;  %2649 = vmatpush3.bf16.msra.mxu0 (!%p2444_p5), %v2994_v36  ;;  %v1126_v15 = vld [vmem:[%s3848_s23 + $0x60] sm:$0xff] (!%p2444_p5)  ;;  %v1127_v16 = vld [vmem:[%s3848_s23 + $0x68] sm:$0xff] (!%p2444_p5)  ;;  %v1501_v18 = vmul.f32 (!%p2444_p5), %v1125_v12, %v1093_v9  ;;  %v1151_v21 = vpack.c.bf16 (!%p2444_p5), %v1093_v9, %v1092_v8  ;;  %v1152_v23 = vpack.c.bf16 (!%p2444_p5), %v1095_v14, %v1094_v13 }
 0x23b   : > { %2697 = vmatpush3.bf16.msra.mxu1 %v2995_v38  ;;  %2650 = vmatprep.subr.bf16.mxu0 %v2996_v39  ;;  %v1502_v19 = vmul.f32 %v1126_v15, %v1094_v13  ;;  %v1503_v20 = vmul.f32 %v1127_v16, %v1095_v14  ;;  %v1506_v35 = vmul.f32 %v1130_v31, %v1098_v29  ;;  %v1104_v56 = vld [vmem:[#allocation2 + $0xb0] sm:$0xff]  ;;  %v1105_v57 = vld [vmem:[#allocation2 + $0xb8] sm:$0xff]  ;;  %v1106_v61 = vld [vmem:[#allocation2 + $0xc0] sm:$0xff] }
 0x23c   : > { %2698 = vmatprep.subr.bf16.mxu1 %v2997_v40  ;;  %v1527_v22 = vpack.c.bf16 %v1501_v18, %v1500_v17  ;;  %v1507_v36 = vmul.f32 %v1131_v32, %v1099_v30  ;;  %v1136_v59 = vld [vmem:[%s3848_s23 + $0xb0] sm:$0xff]  ;;  %v1107_v62 = vld [vmem:[#allocation2 + $0xc8] sm:$0xff]  ;;  %v1138_v63 = vld [vmem:[%s3848_s23 + $0xc0] sm:$0xff]  ;;  %v1513_v2 = vmul.f32 %v1137_v60, %v1105_v57 }
 0x23d   : > { %v1528_v26 = vpack.c.bf16 %v1503_v20, %v1502_v19  ;;  %v1512_v1 = vmul.f32 %v1136_v59, %v1104_v56  ;;  %v1514_v3 = vmul.f32 %v1138_v63, %v1106_v61  ;;  %v1515_v4 = vmul.f32 %v1139_v0, %v1107_v62  ;;  %v1108_v8 = vld [vmem:[#allocation2 + $0xd0] sm:$0xff]  ;;  %v1109_v9 = vld [vmem:[#allocation2 + $0xd8] sm:$0xff]  ;;  %v1110_v13 = vld [vmem:[#allocation2 + $0xe0] sm:$0xff] }
 0x23e   : > { %2651 = vmatpush3.bf16.msra.mxu0 %v2996_v39  ;;  %v1154_v39 = vpack.c.bf16 %v1099_v30, %v1098_v29  ;;  %v1530_v42 = vpack.c.bf16 %v1507_v36, %v1506_v35  ;;  %v1140_v11 = vld [vmem:[%s3848_s23 + $0xd0] sm:$0xff]  ;;  %v1141_v12 = vld [vmem:[%s3848_s23 + $0xd8] sm:$0xff]  ;;  %v1111_v14 = vld [vmem:[#allocation2 + $0xe8] sm:$0xff] }
 0x23f   : > { %2699 = vmatpush3.bf16.msra.mxu1 %v2997_v40  ;;  %v1096_v24 = vld [vmem:[#allocation2 + $0x70] sm:$0xff]  ;;  %v1142_v15 = vld [vmem:[%s3848_s23 + $0xe0] sm:$0xff]  ;;  %v1143_v16 = vld [vmem:[%s3848_s23 + $0xe8] sm:$0xff]  ;;  %v1516_v17 = vmul.f32 %v1140_v11, %v1108_v8  ;;  %v1517_v18 = vmul.f32 %v1141_v12, %v1109_v9 }
 0x240   : > { %v1504_v33 = vmul.f32 %v1128_v27, %v1096_v24  ;;  %v1100_v40 = vld [vmem:[#allocation2 + $0x90] sm:$0xff]  ;;  %v1518_v19 = vmul.f32 %v1142_v15, %v1110_v13  ;;  %v1519_v20 = vmul.f32 %v1143_v16, %v1111_v14 }
 0x241   : > { %2653 = vmatmul.mubr.bf16.vlgmr.msra.gmra.mrb[0].mxu0 %v1147_v53  ;;  %v1097_v25 = vld [vmem:[#allocation2 + $0x78] sm:$0xff]  ;;  %v1508_v49 = vmul.f32 %v1132_v43, %v1100_v40  ;;  %v1155_v53 = vpack.c.bf16 %v1101_v41, %v1100_v40  ;;  %v1144_v27 = vld [vmem:[%s3848_s23 + $0xf0] sm:$0xff] }
 0x242   : > { %2701 = vmatmul.mubr.bf16.vlgmr.msra.gmra.mrb[0].mxu1 %v1523_v54  ;;  %2656 = vmatprep.mubr.bf16.mxu0 %v1148_v55  ;;  %v1505_v34 = vmul.f32 %v1129_v28, %v1097_v25  ;;  %v1153_v37 = vpack.c.bf16 %v1097_v25, %v1096_v24  ;;  %v1156_v55 = vpack.c.bf16 %v1103_v46, %v1102_v45  ;;  %v1112_v24 = vld [vmem:[#allocation2 + $0xf0] sm:$0xff]  ;;  %v1145_v28 = vld [vmem:[%s3848_s23 + $0xf8] sm:$0xff] }
 0x243   : > { %2704 = vmatprep.mubr.bf16.mxu1 %v1524_v58  ;;  %v1531_v54 = vpack.c.bf16 %v1509_v50, %v1508_v49  ;;  %v1532_v58 = vpack.c.bf16 %v1511_v52, %v1510_v51  ;;  %v1536_v25 = vpack.c.bf16 %v1519_v20, %v1518_v19  ;;  %v1520_v29 = vmul.f32 %v1144_v27, %v1112_v24 }
 0x244   : > { %v1529_v38 = vpack.c.bf16 %v1505_v34, %v1504_v33  ;;  %v3947_v33 = vld [vmem:[%s4621_s11] ss:$0 sm:$0xff] }
 0x245   : > { %v3952_v34 = vld [vmem:[%s4622_s15] ss:$0 sm:$0xff] }
 0x249   : > { %2657 = vmatmul.mubr.bf16.gmra.mrb[4].mxu0 %v1149_v5  ;;  %v1157_v5 = vpack.c.bf16 %v1105_v57, %v1104_v56 }
 0x24a   : > { %2705 = vmatmul.mubr.bf16.gmra.mrb[4].mxu1 %v1525_v6  ;;  %2660 = vmatprep.mubr.bf16.mxu0 %v1150_v7  ;;  %v1533_v6 = vpack.c.bf16 %v1513_v2, %v1512_v1  ;;  %v1158_v7 = vpack.c.bf16 %v1107_v62, %v1106_v61 }
 0x24b   : > { %2708 = vmatprep.mubr.bf16.mxu1 %v1526_v10  ;;  %v1534_v10 = vpack.c.bf16 %v1515_v4, %v1514_v3 }
 0x251   : > { %2661 = vmatmul.mubr.bf16.gmra.mrb[8].mxu0 %v1151_v21  ;;  %v1159_v21 = vpack.c.bf16 %v1109_v9, %v1108_v8 }
 0x252   : > { %2709 = vmatmul.mubr.bf16.gmra.mrb[8].mxu1 %v1527_v22  ;;  %2664 = vmatprep.mubr.bf16.mxu0 %v1152_v23  ;;  %v1535_v22 = vpack.c.bf16 %v1517_v18, %v1516_v17  ;;  %v1160_v23 = vpack.c.bf16 %v1111_v14, %v1110_v13 }
 0x253   : > { %2712 = vmatprep.mubr.bf16.mxu1 %v1528_v26  ;;  %v1113_v26 = vld [vmem:[#allocation2 + $0xf8] sm:$0xff] }
 0x254   : > { %v1521_v30 = vmul.f32 %v1145_v28, %v1113_v26  ;;  %v1161_v31 = vpack.c.bf16 %v1113_v26, %v1112_v24 }
 0x256   : > { %v1537_v32 = vpack.c.bf16 %v1521_v30, %v1520_v29 }
 0x259   : > { %2665 = vmatmul.mubr.bf16.gmra.mrb[12].mxu0 %v1153_v37 }
 0x25a   : > { %2713 = vmatmul.mubr.bf16.gmra.mrb[12].mxu1 %v1529_v38  ;;  %2668 = vmatprep.mubr.bf16.mxu0 %v1154_v39 }
 0x25b   : > { %2716 = vmatprep.mubr.bf16.mxu1 %v1530_v42 }
 0x261   : > { %2669 = vmatmul.mubr.bf16.gmra.mrb[16].mxu0 %v1155_v53 }
 0x262   : > { %2717 = vmatmul.mubr.bf16.gmra.mrb[16].mxu1 %v1531_v54  ;;  %2672 = vmatprep.mubr.bf16.mxu0 %v1156_v55 }
 0x263   : > { %2720 = vmatprep.mubr.bf16.mxu1 %v1532_v58 }
 0x269   : > { %2673 = vmatmul.mubr.bf16.gmra.mrb[20].mxu0 %v1157_v5 }
 0x26a   : > { %2721 = vmatmul.mubr.bf16.gmra.mrb[20].mxu1 %v1533_v6  ;;  %2676 = vmatprep.mubr.bf16.mxu0 %v1158_v7 }
 0x26b   : > { %2724 = vmatprep.mubr.bf16.mxu1 %v1534_v10 }
 0x271   : > { %2677 = vmatmul.mubr.bf16.gmra.mrb[24].mxu0 %v1159_v21 }
 0x272   : > { %2725 = vmatmul.mubr.bf16.gmra.mrb[24].mxu1 %v1535_v22  ;;  %2680 = vmatprep.mubr.bf16.mxu0 %v1160_v23 }
 0x273   : > { %2728 = vmatprep.mubr.bf16.mxu1 %v1536_v25 }
 0x279   : > { %2681 = vmatmul.mubr.bf16.gmra.mrb[28].mxu0 %v1161_v31 }
 0x27a   : > { %2729 = vmatmul.mubr.bf16.gmra.mrb[28].mxu1 %v1537_v32 }
 0x314   : > { %v2654_v35 = vpop.f32.mrb[0].mxu0 }
 0x315   : > { %v1276_v36 = vadd.f32 %v2654_v35, %v3947_v33  ;;  %v2702_v37 = vpop.f32.mrb[0].mxu1  ;;  %v1267_v38 = vpop.f32.mrb[1].mxu0 }
 0x316   : > { %v1652_v39 = vadd.f32 %v2702_v37, %v3952_v34  ;;  %v1268_v40 = vadd.f32 %v3947_v33, %v1267_v38  ;;  %v1643_v41 = vpop.f32.mrb[1].mxu1  ;;  %v2655_v42 = vpop.f32.mrb[2].mxu0 }
 0x317   : > { %vm1396_vm0 = vcmp.gt.f32.partialorder %v1276_v36, 0.0  ;;  %v1428_v43 = vmul.f32 0.01, %v1276_v36  ;;  %v1644_v44 = vadd.f32 %v3952_v34, %v1643_v41  ;;  %v1279_v45 = vadd.f32 %v2655_v42, %v3947_v33  ;;  %v2703_v46 = vpop.f32.mrb[2].mxu1  ;;  %v1270_v47 = vpop.f32.mrb[3].mxu0 }
 0x318   : > { %vm1772_vm1 = vcmp.gt.f32.partialorder %v1652_v39, 0.0  ;;  %v1804_v48 = vmul.f32 0.01, %v1652_v39  ;;  %vm1394_vm2 = vcmp.gt.f32.partialorder %v1268_v40, 0.0  ;;  %v1426_v49 = vmul.f32 0.01, %v1268_v40 }
 0x319   : > { %v1460_v50 = vsel %vm1396_vm0, %v1276_v36, %v1428_v43  ;;  %vm1770_vm3 = vcmp.gt.f32.partialorder %v1644_v44, 0.0  ;;  %v1802_v51 = vmul.f32 0.01, %v1644_v44  ;;  %vm1397_vm4 = vcmp.gt.f32.partialorder %v1279_v45, 0.0  ;;  %v1646_v52 = vpop.f32.mrb[3].mxu1 }
 0x31a   : > { %v1836_v53 = vsel %vm1772_vm1, %v1652_v39, %v1804_v48  ;;  %v1458_v54 = vsel %vm1394_vm2, %v1268_v40, %v1426_v49  ;;  %v1429_v55 = vmul.f32 0.01, %v1279_v45  ;;  %v1655_v56 = vadd.f32 %v2703_v46, %v3952_v34 }
 0x31b   : > { %v1834_v57 = vsel %vm1770_vm3, %v1644_v44, %v1802_v51  ;;  %v1271_v58 = vadd.f32 %v3947_v33, %v1270_v47  ;;  %v1647_v59 = vadd.f32 %v3952_v34, %v1646_v52  ;;  %v3962_v60 = vadd.f32 %v1836_v53, %v1460_v50 }
 0x31c   : > { %v1461_v61 = vsel %vm1397_vm4, %v1279_v45, %v1429_v55  ;;  %vm1773_vm5 = vcmp.gt.f32.partialorder %v1655_v56, 0.0  ;;  %v1805_v62 = vmul.f32 0.01, %v1655_v56  ;;  %v2658_v63 = vpop.f32.mrb[4].mxu0  ;;  %v3964_v0 = vadd.f32 %v1834_v57, %v1458_v54 }
 0x31d   : > { %vm1395_vm6 = vcmp.gt.f32.partialorder %v1271_v58, 0.0  ;;  %v1427_v1 = vmul.f32 0.01, %v1271_v58  ;;  %vm1771_vm7 = vcmp.gt.f32.partialorder %v1647_v59, 0.0  ;;  %v1803_v2 = vmul.f32 0.01, %v1647_v59 }
 0x31e   : > { %1900 = vst [vmem:[%s3858_s0 + $0x10] sm:$0xff] %v3962_v60  ;;  %v1837_v3 = vsel %vm1773_vm5, %v1655_v56, %v1805_v62  ;;  %v1292_v4 = vadd.f32 %v2658_v63, %v3947_v33  ;;  %v2706_v5 = vpop.f32.mrb[4].mxu1  ;;  %v1283_v6 = vpop.f32.mrb[5].mxu0  ;;  %v1932_v7 = vmul.f32 %v3962_v60, %v3962_v60  ;;  %v1930_v8 = vmul.f32 %v3964_v0, %v3964_v0 }
 0x31f   : > { %1898 = vst [vmem:[%s3858_s0] sm:$0xff] %v3964_v0  ;;  %v1459_v9 = vsel %vm1395_vm6, %v1271_v58, %v1427_v1  ;;  %v1835_v10 = vsel %vm1771_vm7, %v1647_v59, %v1803_v2  ;;  %v1668_v11 = vadd.f32 %v2706_v5, %v3952_v34  ;;  %v1284_v12 = vadd.f32 %v3947_v33, %v1283_v6  ;;  %v1659_v13 = vpop.f32.mrb[5].mxu1  ;;  %v2659_v14 = vpop.f32.mrb[6].mxu0 }
 0x320   : > { %vm1400_vm8 = vcmp.gt.f32.partialorder %v1292_v4, 0.0  ;;  %v1432_v15 = vmul.f32 0.01, %v1292_v4  ;;  %v1660_v16 = vadd.f32 %v3952_v34, %v1659_v13  ;;  %v2707_v17 = vpop.f32.mrb[6].mxu1  ;;  %1966 = vadd.xlane.f32.xlu1 %v1932_v7  ;;  %v1295_v18 = vadd.f32 %v2659_v14, %v3947_v33  ;;  %v1286_v19 = vpop.f32.mrb[7].mxu0  ;;  %1962 = vadd.xlane.f32.xlu0 %v1930_v8 }
 0x321   : > { %vm1776_vm9 = vcmp.gt.f32.partialorder %v1668_v11, 0.0  ;;  %v1808_v20 = vmul.f32 0.01, %v1668_v11  ;;  %vm1398_vm10 = vcmp.gt.f32.partialorder %v1284_v12, 0.0  ;;  %v1430_v21 = vmul.f32 0.01, %v1284_v12 }
 0x322   : > { %v3979_v22 = vsel %vm1400_vm8, %v1292_v4, %v1432_v15  ;;  %vm1774_vm11 = vcmp.gt.f32.partialorder %v1660_v16, 0.0  ;;  %v1806_v23 = vmul.f32 0.01, %v1660_v16  ;;  %v1671_v24 = vadd.f32 %v2707_v17, %v3952_v34  ;;  %v1662_v25 = vpop.f32.mrb[7].mxu1 }
 0x323   : > { %v1840_v26 = vsel %vm1776_vm9, %v1668_v11, %v1808_v20  ;;  %v3982_v27 = vsel %vm1398_vm10, %v1284_v12, %v1430_v21  ;;  %vm1401_vm12 = vcmp.gt.f32.partialorder %v1295_v18, 0.0  ;;  %v1433_v28 = vmul.f32 0.01, %v1295_v18 }
 0x324   : > { %v3984_v29 = vsel %vm1774_vm11, %v1660_v16, %v1806_v23  ;;  %vm1777_vm13 = vcmp.gt.f32.partialorder %v1671_v24, 0.0  ;;  %v1809_v30 = vmul.f32 0.01, %v1671_v24  ;;  %v1287_v31 = vadd.f32 %v3947_v33, %v1286_v19  ;;  %v2662_v32 = vpop.f32.mrb[8].mxu0 }
 0x325   : > { %v1465_v35 = vsel %vm1401_vm12, %v1295_v18, %v1433_v28  ;;  %v1663_v36 = vadd.f32 %v3952_v34, %v1662_v25  ;;  %v3988_v37 = vadd.f32 %v1837_v3, %v1461_v61  ;;  %v3990_v38 = vadd.f32 %v1835_v10, %v1459_v9  ;;  %v2710_v39 = vpop.f32.mrb[8].mxu1  ;;  %v1299_v40 = vpop.f32.mrb[9].mxu0 }
 0x326   : > { %v1841_v41 = vsel %vm1777_vm13, %v1671_v24, %v1809_v30  ;;  %vm1399_vm14 = vcmp.gt.f32.partialorder %v1287_v31, 0.0  ;;  %v1431_v42 = vmul.f32 0.01, %v1287_v31  ;;  %v1308_v43 = vadd.f32 %v2662_v32, %v3947_v33  ;;  %v1675_v44 = vpop.f32.mrb[9].mxu1  ;;  %v2663_v45 = vpop.f32.mrb[10].mxu0 }
 0x327   : > { %vm1775_vm15 = vcmp.gt.f32.partialorder %v1663_v36, 0.0  ;;  %v1807_v46 = vmul.f32 0.01, %v1663_v36  ;;  %v1933_v47 = vmul.f32 %v3988_v37, %v3988_v37  ;;  %1901 = vst [vmem:[%s3858_s0 + $0x18] sm:$0xff] %v3988_v37  ;;  %1899 = vst [vmem:[%s3858_s0 + $0x8] sm:$0xff] %v3990_v38  ;;  %v1931_v48 = vmul.f32 %v3990_v38, %v3990_v38  ;;  %v2711_v49 = vpop.f32.mrb[10].mxu1 }
 0x328   : > { %v1302_v50 = vpop.f32.mrb[11].mxu0  ;;  %v1463_v51 = vsel %vm1399_vm14, %v1287_v31, %v1431_v42  ;;  %vm1404_vm0 = vcmp.gt.f32.partialorder %v1308_v43, 0.0  ;;  %v1436_v52 = vmul.f32 0.01, %v1308_v43  ;;  %v1684_v53 = vadd.f32 %v2710_v39, %v3952_v34  ;;  %v1678_v54 = vpop.f32.mrb[11].mxu1 }
 0x329   : > { %v1839_v55 = vsel %vm1775_vm15, %v1663_v36, %v1807_v46  ;;  %1968 = vadd.xlane.f32.xlu1 %v1933_v47  ;;  %1964 = vadd.xlane.f32.xlu0 %v1931_v48  ;;  %v1300_v56 = vadd.f32 %v3947_v33, %v1299_v40  ;;  %v1676_v57 = vadd.f32 %v3952_v34, %v1675_v44 }
 0x32a   : > { %v4004_v58 = vsel %vm1404_vm0, %v1308_v43, %v1436_v52  ;;  %vm1780_vm1 = vcmp.gt.f32.partialorder %v1684_v53, 0.0  ;;  %v1812_v59 = vmul.f32 0.01, %v1684_v53  ;;  %v1311_v61 = vadd.f32 %v2663_v45, %v3947_v33 }
 0x32b   : > { %vm1402_vm2 = vcmp.gt.f32.partialorder %v1300_v56, 0.0  ;;  %v1434_v62 = vmul.f32 0.01, %v1300_v56  ;;  %vm1778_vm3 = vcmp.gt.f32.partialorder %v1676_v57, 0.0  ;;  %v1810_v63 = vmul.f32 0.01, %v1676_v57 }
 0x32c   : > { %v4007_v1 = vsel %vm1780_vm1, %v1684_v53, %v1812_v59  ;;  %vm1405_vm4 = vcmp.gt.f32.partialorder %v1311_v61, 0.0  ;;  %v1437_v2 = vmul.f32 0.01, %v1311_v61  ;;  %v1687_v3 = vadd.f32 %v2711_v49, %v3952_v34  ;;  %v2666_v4 = vpop.f32.mrb[12].mxu0 }
 0x32d   : > { %v4010_v5 = vsel %vm1402_vm2, %v1300_v56, %v1434_v62  ;;  %v4012_v6 = vsel %vm1778_vm3, %v1676_v57, %v1810_v63  ;;  %v1303_v7 = vadd.f32 %v3947_v33, %v1302_v50  ;;  %v1679_v8 = vadd.f32 %v3952_v34, %v1678_v54  ;;  %v2714_v9 = vpop.f32.mrb[12].mxu1  ;;  %v1315_v10 = vpop.f32.mrb[13].mxu0 }
 0x32e   : > { %v4016_v11 = vsel %vm1405_vm4, %v1311_v61, %v1437_v2  ;;  %vm1781_vm5 = vcmp.gt.f32.partialorder %v1687_v3, 0.0  ;;  %v1813_v12 = vmul.f32 0.01, %v1687_v3  ;;  %v4019_v13 = vadd.f32 %v1840_v26, %v3979_v22  ;;  %v1691_v14 = vpop.f32.mrb[13].mxu1  ;;  %v2667_v15 = vpop.f32.mrb[14].mxu0 }
 0x32f   : > { %vm1403_vm6 = vcmp.gt.f32.partialorder %v1303_v7, 0.0  ;;  %v1435_v16 = vmul.f32 0.01, %v1303_v7  ;;  %vm1779_vm7 = vcmp.gt.f32.partialorder %v1679_v8, 0.0  ;;  %v1811_v17 = vmul.f32 0.01, %v1679_v8 }
 0x330   : > { %v1845_v18 = vsel %vm1781_vm5, %v1687_v3, %v1813_v12  ;;  %1904 = vst [vmem:[%s3858_s0 + $0x30] sm:$0xff] %v4019_v13  ;;  %v1936_v19 = vmul.f32 %v4019_v13, %v4019_v13  ;;  %v4025_v20 = vadd.f32 %v1841_v41, %v1465_v35  ;;  %v4029_v21 = vadd.f32 %v3984_v29, %v3982_v27  ;;  %v2715_v22 = vpop.f32.mrb[14].mxu1  ;;  %v1318_v23 = vpop.f32.mrb[15].mxu0 }
 0x331   : > { %v4031_v24 = vsel %vm1403_vm6, %v1303_v7, %v1435_v16  ;;  %v4033_v25 = vsel %vm1779_vm7, %v1679_v8, %v1811_v17  ;;  %v1324_v26 = vadd.f32 %v2666_v4, %v3947_v33  ;;  %v1700_v28 = vadd.f32 %v2714_v9, %v3952_v34  ;;  %v1694_v30 = vpop.f32.mrb[15].mxu1 }
 0x332   : > { %1974 = vadd.xlane.f32.xlu0 %v1936_v19  ;;  %v1937_v31 = vmul.f32 %v4025_v20, %v4025_v20  ;;  %1905 = vst [vmem:[%s3858_s0 + $0x38] sm:$0xff] %v4025_v20  ;;  %1902 = vst [vmem:[%s3858_s0 + $0x20] sm:$0xff] %v4029_v21  ;;  %v1934_v27 = vmul.f32 %v4029_v21, %v4029_v21  ;;  %v4045_v29 = vadd.f32 %v1839_v55, %v1463_v51 }
 0x333   : > { %v1316_v32 = vadd.f32 %v3947_v33, %v1315_v10  ;;  %vm1408_vm8 = vcmp.gt.f32.partialorder %v1324_v26, 0.0  ;;  %v1440_v35 = vmul.f32 0.01, %v1324_v26  ;;  %vm1784_vm9 = vcmp.gt.f32.partialorder %v1700_v28, 0.0 }
 0x334   : > { %v1816_v36 = vmul.f32 0.01, %v1700_v28  ;;  %1976 = vadd.xlane.f32.xlu1 %v1937_v31  ;;  %v1935_v39 = vmul.f32 %v4045_v29, %v4045_v29  ;;  %1903 = vst [vmem:[%s3858_s0 + $0x28] sm:$0xff] %v4045_v29  ;;  %v1692_v41 = vadd.f32 %v3952_v34, %v1691_v14  ;;  %v2670_v42 = vpop.f32.mrb[16].mxu0  ;;  %v1327_v45 = vadd.f32 %v2667_v15, %v3947_v33 }
 0x335   : > { %vm1406_vm10 = vcmp.gt.f32.partialorder %v1316_v32, 0.0  ;;  %v1438_v40 = vmul.f32 0.01, %v1316_v32  ;;  %v4053_v43 = vsel %vm1408_vm8, %v1324_v26, %v1440_v35  ;;  %v1703_v46 = vadd.f32 %v2715_v22, %v3952_v34  ;;  %v2718_v47 = vpop.f32.mrb[16].mxu1  ;;  %v1331_v48 = vpop.f32.mrb[17].mxu0 }
 0x336   : > { %v4055_v44 = vsel %vm1784_vm9, %v1700_v28, %v1816_v36  ;;  %1970 = vadd.xlane.f32.xlu0 %v1934_v27  ;;  %vm1782_vm11 = vcmp.gt.f32.partialorder %v1692_v41, 0.0  ;;  %v1814_v50 = vmul.f32 0.01, %v1692_v41  ;;  %v1319_v51 = vadd.f32 %v3947_v33, %v1318_v23  ;;  %v1707_v52 = vpop.f32.mrb[17].mxu1  ;;  %v2671_v53 = vpop.f32.mrb[18].mxu0 }
 0x337   : > { %v4059_v49 = vsel %vm1406_vm10, %v1316_v32, %v1438_v40  ;;  %vm1409_vm12 = vcmp.gt.f32.partialorder %v1327_v45, 0.0  ;;  %v1441_v54 = vmul.f32 0.01, %v1327_v45  ;;  %vm1785_vm13 = vcmp.gt.f32.partialorder %v1703_v46, 0.0  ;;  %v2719_v61 = vpop.f32.mrb[18].mxu1  ;;  %v1334_v62 = vpop.f32.mrb[19].mxu0 }
 0x338   : > { %v1817_v55 = vmul.f32 0.01, %v1703_v46  ;;  %1972 = vadd.xlane.f32.xlu1 %v1935_v39  ;;  %v4062_v56 = vsel %vm1782_vm11, %v1692_v41, %v1814_v50  ;;  %vm1407_vm14 = vcmp.gt.f32.partialorder %v1319_v51, 0.0  ;;  %v1439_v57 = vmul.f32 0.01, %v1319_v51  ;;  %v1710_v7 = vpop.f32.mrb[19].mxu1 }
 0x339   : > { %v1695_v59 = vadd.f32 %v3952_v34, %v1694_v30  ;;  %v1473_v63 = vsel %vm1409_vm12, %v1327_v45, %v1441_v54  ;;  %v4067_v3 = vadd.f32 %v4007_v1, %v4004_v58  ;;  %v4070_v4 = vadd.f32 %v1845_v18, %v4016_v11 }
 0x33a   : > { %v1849_v2 = vsel %vm1785_vm13, %v1703_v46, %v1817_v55  ;;  %v4072_v8 = vsel %vm1407_vm14, %v1319_v51, %v1439_v57  ;;  %v4076_v10 = vadd.f32 %v4012_v6, %v4010_v5  ;;  %v1340_v1 = vadd.f32 %v2670_v42, %v3947_v33 }
 0x33b   : > { %vm1783_vm15 = vcmp.gt.f32.partialorder %v1695_v59, 0.0  ;;  %v1815_v9 = vmul.f32 0.01, %v1695_v59  ;;  %1908 = vst [vmem:[%s3858_s0 + $0x50] sm:$0xff] %v4067_v3  ;;  %v1940_v12 = vmul.f32 %v4067_v3, %v4067_v3  ;;  %1909 = vst [vmem:[%s3858_s0 + $0x58] sm:$0xff] %v4070_v4  ;;  %v1941_v58 = vmul.f32 %v4070_v4, %v4070_v4 }
 0x33c   : > { %v1716_v11 = vadd.f32 %v2718_v47, %v3952_v34  ;;  %1906 = vst [vmem:[%s3858_s0 + $0x40] sm:$0xff] %v4076_v10  ;;  %v1938_v5 = vmul.f32 %v4076_v10, %v4076_v10  ;;  %v4094_v6 = vadd.f32 %v4033_v25, %v4031_v24  ;;  %v1332_v15 = vadd.f32 %v3947_v33, %v1331_v48  ;;  %v2674_v16 = vpop.f32.mrb[20].mxu0 }
 0x33d   : > { %v1847_v14 = vsel %vm1783_vm15, %v1695_v59, %v1815_v9  ;;  %1982 = vadd.xlane.f32.xlu0 %v1940_v12  ;;  %1984 = vadd.xlane.f32.xlu1 %v1941_v58  ;;  %vm1412_vm0 = vcmp.gt.f32.partialorder %v1340_v1, 0.0  ;;  %v1444_v17 = vmul.f32 0.01, %v1340_v1  ;;  %v1708_v23 = vadd.f32 %v3952_v34, %v1707_v52  ;;  %v2722_v24 = vpop.f32.mrb[20].mxu1  ;;  %v1347_v25 = vpop.f32.mrb[21].mxu0 }
 0x33e   : > { %vm1788_vm1 = vcmp.gt.f32.partialorder %v1716_v11, 0.0  ;;  %v1820_v18 = vmul.f32 0.01, %v1716_v11  ;;  %1907 = vst [vmem:[%s3858_s0 + $0x48] sm:$0xff] %v4094_v6  ;;  %v1939_v19 = vmul.f32 %v4094_v6, %v4094_v6  ;;  %vm1410_vm2 = vcmp.gt.f32.partialorder %v1332_v15, 0.0  ;;  %v1723_v27 = vpop.f32.mrb[21].mxu1 }
 0x33f   : > { %v1442_v22 = vmul.f32 0.01, %v1332_v15  ;;  %v4102_v26 = vsel %vm1412_vm0, %v1340_v1, %v1444_v17  ;;  %v1343_v30 = vadd.f32 %v2671_v53, %v3947_v33  ;;  %v1719_v31 = vadd.f32 %v2719_v61, %v3952_v34  ;;  %v2675_v32 = vpop.f32.mrb[22].mxu0  ;;  %v2723_v40 = vpop.f32.mrb[22].mxu1 }
 0x340   : > { %v4104_v28 = vsel %vm1788_vm1, %v1716_v11, %v1820_v18  ;;  %vm1786_vm3 = vcmp.gt.f32.partialorder %v1708_v23, 0.0  ;;  %v1818_v36 = vmul.f32 0.01, %v1708_v23  ;;  %v1335_v39 = vadd.f32 %v3947_v33, %v1334_v62  ;;  %v1350_v41 = vpop.f32.mrb[23].mxu0  ;;  %v1726_v50 = vpop.f32.mrb[23].mxu1 }
 0x341   : > { %v4108_v35 = vsel %vm1410_vm2, %v1332_v15, %v1442_v22  ;;  %1978 = vadd.xlane.f32.xlu0 %v1938_v5  ;;  %1980 = vadd.xlane.f32.xlu1 %v1939_v19  ;;  %vm1413_vm4 = vcmp.gt.f32.partialorder %v1343_v30, 0.0  ;;  %v1445_v42 = vmul.f32 0.01, %v1343_v30  ;;  %vm1789_vm5 = vcmp.gt.f32.partialorder %v1719_v31, 0.0 }
 0x342   : > { %v1821_v45 = vmul.f32 0.01, %v1719_v31  ;;  %v4111_v46 = vsel %vm1786_vm3, %v1708_v23, %v1818_v36  ;;  %vm1411_vm6 = vcmp.gt.f32.partialorder %v1335_v39, 0.0  ;;  %v1443_v47 = vmul.f32 0.01, %v1335_v39 }
 0x343   : > { %v1711_v48 = vadd.f32 %v3952_v34, %v1710_v7  ;;  %v1477_v51 = vsel %vm1413_vm4, %v1343_v30, %v1445_v42  ;;  %v4116_v53 = vadd.f32 %v4055_v44, %v4053_v43  ;;  %v4118_v54 = vadd.f32 %v1849_v2, %v1473_v63 }
 0x344   : > { %v1853_v52 = vsel %vm1789_vm5, %v1719_v31, %v1821_v45  ;;  %v4120_v55 = vsel %vm1411_vm6, %v1335_v39, %v1443_v47  ;;  %v4124_v59 = vadd.f32 %v4062_v56, %v4059_v49  ;;  %v4126_v61 = vpop.f32.mrb[24].mxu0  ;;  %v1356_v44 = vadd.f32 %v2674_v16, %v3947_v33 }
 0x345   : > { %vm1787_vm7 = vcmp.gt.f32.partialorder %v1711_v48, 0.0  ;;  %v1819_v57 = vmul.f32 0.01, %v1711_v48  ;;  %1912 = vst [vmem:[%s3858_s0 + $0x70] sm:$0xff] %v4116_v53  ;;  %v1944_v62 = vmul.f32 %v4116_v53, %v4116_v53  ;;  %1913 = vst [vmem:[%s3858_s0 + $0x78] sm:$0xff] %v4118_v54  ;;  %v1945_v43 = vmul.f32 %v4118_v54, %v4118_v54  ;;  %v2726_v2 = vpop.f32.mrb[24].mxu1 }
 0x346   : > { %v1732_v63 = vadd.f32 %v2722_v24, %v3952_v34  ;;  %v4138_v49 = vpop.f32.mrb[25].mxu0  ;;  %1910 = vst [vmem:[%s3858_s0 + $0x60] sm:$0xff] %v4124_v59  ;;  %v1942_v7 = vmul.f32 %v4124_v59, %v4124_v59  ;;  %v4147_v9 = vadd.f32 %v1847_v14, %v4072_v8  ;;  %v1348_v12 = vadd.f32 %v3947_v33, %v1347_v25  ;;  %v4150_v58 = vpop.f32.mrb[25].mxu1 }
 0x347   : > { %v4140_v56 = vsel %vm1787_vm7, %v1711_v48, %v1819_v57  ;;  %v4152_v1 = vpop.f32.mrb[26].mxu0  ;;  %1990 = vadd.xlane.f32.xlu0 %v1944_v62  ;;  %1992 = vadd.xlane.f32.xlu1 %v1945_v43  ;;  %vm1416_vm8 = vcmp.gt.f32.partialorder %v1356_v44, 0.0  ;;  %v1448_v11 = vmul.f32 0.01, %v1356_v44  ;;  %v1724_v14 = vadd.f32 %v3952_v34, %v1723_v27  ;;  %v2727_v16 = vpop.f32.mrb[26].mxu1 }
 0x348   : > { %vm1792_vm9 = vcmp.gt.f32.partialorder %v1732_v63, 0.0  ;;  %v1824_v5 = vmul.f32 0.01, %v1732_v63  ;;  %1911 = vst [vmem:[%s3858_s0 + $0x68] sm:$0xff] %v4147_v9  ;;  %v1943_v15 = vmul.f32 %v4147_v9, %v4147_v9  ;;  %vm1414_vm10 = vcmp.gt.f32.partialorder %v1348_v12, 0.0  ;;  %v4159_v17 = vpop.f32.mrb[27].mxu0 }
 0x349   : > { %v1446_v8 = vmul.f32 0.01, %v1348_v12  ;;  %v4161_v18 = vsel %vm1416_vm8, %v1356_v44, %v1448_v11  ;;  %v1359_v22 = vadd.f32 %v2675_v32, %v3947_v33  ;;  %v1735_v23 = vadd.f32 %v2723_v40, %v3952_v34  ;;  %v4167_v24 = vpop.f32.mrb[27].mxu1 }
 0x34a   : > { %v4163_v19 = vsel %vm1792_vm9, %v1732_v63, %v1824_v5  ;;  %vm1790_vm11 = vcmp.gt.f32.partialorder %v1724_v14, 0.0  ;;  %v1822_v30 = vmul.f32 0.01, %v1724_v14  ;;  %v1351_v31 = vadd.f32 %v3947_v33, %v1350_v41 }
 0x34b   : > { %v4169_v25 = vsel %vm1414_vm10, %v1348_v12, %v1446_v8  ;;  %1986 = vadd.xlane.f32.xlu0 %v1942_v7  ;;  %1988 = vadd.xlane.f32.xlu1 %v1943_v15  ;;  %vm1417_vm12 = vcmp.gt.f32.partialorder %v1359_v22, 0.0  ;;  %v1449_v27 = vmul.f32 0.01, %v1359_v22  ;;  %vm1793_vm13 = vcmp.gt.f32.partialorder %v1735_v23, 0.0 }
 0x34c   : > { %v1825_v36 = vmul.f32 0.01, %v1735_v23  ;;  %v4172_v39 = vsel %vm1790_vm11, %v1724_v14, %v1822_v30  ;;  %vm1415_vm14 = vcmp.gt.f32.partialorder %v1351_v31, 0.0  ;;  %v1447_v32 = vmul.f32 0.01, %v1351_v31  ;;  %v4175_v42 = vpop.f32.mrb[28].mxu0 }
 0x34d   : > { %v1727_v40 = vadd.f32 %v3952_v34, %v1726_v50  ;;  %v1481_v45 = vsel %vm1417_vm12, %v1359_v22, %v1449_v27  ;;  %v4179_v41 = vadd.f32 %v4104_v28, %v4102_v26  ;;  %v4181_v48 = vadd.f32 %v1853_v52, %v1477_v51  ;;  %v4183_v57 = vpop.f32.mrb[28].mxu1  ;;  %v4185_v62 = vpop.f32.mrb[29].mxu0 }
 0x34e   : > { %v1857_v47 = vsel %vm1793_vm13, %v1735_v23, %v1825_v36  ;;  %v4187_v43 = vsel %vm1415_vm14, %v1351_v31, %v1447_v32  ;;  %v4191_v44 = vadd.f32 %v4111_v46, %v4108_v35  ;;  %v4193_v63 = vpop.f32.mrb[29].mxu1  ;;  %v4195_v7 = vpop.f32.mrb[30].mxu0  ;;  %v1372_v51 = vadd.f32 %v4126_v61, %v3947_v33 }
 0x34f   : > { %vm1791_vm15 = vcmp.gt.f32.partialorder %v1727_v40, 0.0  ;;  %v1823_v50 = vmul.f32 0.01, %v1727_v40  ;;  %1916 = vst [vmem:[%s3858_s0 + $0x90] sm:$0xff] %v4179_v41  ;;  %v1948_v26 = vmul.f32 %v4179_v41, %v4179_v41  ;;  %1917 = vst [vmem:[%s3858_s0 + $0x98] sm:$0xff] %v4181_v48  ;;  %v1949_v28 = vmul.f32 %v4181_v48, %v4181_v48  ;;  %v4208_v46 = vpop.f32.mrb[30].mxu1 }
 0x350   : > { %v1748_v35 = vadd.f32 %v2726_v2, %v3952_v34  ;;  %v4210_v52 = vpop.f32.mrb[31].mxu0  ;;  %1914 = vst [vmem:[%s3858_s0 + $0x80] sm:$0xff] %v4191_v44  ;;  %v1946_v11 = vmul.f32 %v4191_v44, %v4191_v44  ;;  %v4218_v5 = vadd.f32 %v4140_v56, %v4120_v55  ;;  %v1364_v61 = vadd.f32 %v3947_v33, %v4138_v49  ;;  %v4222_v15 = vpop.f32.mrb[31].mxu1 }
 0x351   : > { %v1855_v12 = vsel %vm1791_vm15, %v1727_v40, %v1823_v50  ;;  %1998 = vadd.xlane.f32.xlu0 %v1948_v26  ;;  %2000 = vadd.xlane.f32.xlu1 %v1949_v28  ;;  %vm1420_vm0 = vcmp.gt.f32.partialorder %v1372_v51, 0.0  ;;  %v1452_v2 = vmul.f32 0.01, %v1372_v51  ;;  %v1740_v55 = vadd.f32 %v3952_v34, %v4150_v58 }
 0x352   : > { %vm1796_vm1 = vcmp.gt.f32.partialorder %v1748_v35, 0.0  ;;  %v1828_v8 = vmul.f32 0.01, %v1748_v35  ;;  %1915 = vst [vmem:[%s3858_s0 + $0x88] sm:$0xff] %v4218_v5  ;;  %v1947_v14 = vmul.f32 %v4218_v5, %v4218_v5  ;;  %vm1418_vm2 = vcmp.gt.f32.partialorder %v1364_v61, 0.0 }
 0x353   : > { %v1450_v22 = vmul.f32 0.01, %v1364_v61  ;;  %v4230_v56 = vsel %vm1420_vm0, %v1372_v51, %v1452_v2  ;;  %v1375_v23 = vadd.f32 %v4152_v1, %v3947_v33  ;;  %v1751_v30 = vadd.f32 %v2727_v16, %v3952_v34 }
 0x354   : > { %v4232_v49 = vsel %vm1796_vm1, %v1748_v35, %v1828_v8  ;;  %vm1794_vm3 = vcmp.gt.f32.partialorder %v1740_v55, 0.0  ;;  %v1826_v27 = vmul.f32 0.01, %v1740_v55  ;;  %v1367_v36 = vadd.f32 %v3947_v33, %v4159_v17 }
 0x355   : > { %v4237_v31 = vsel %vm1418_vm2, %v1364_v61, %v1450_v22  ;;  %1994 = vadd.xlane.f32.xlu0 %v1946_v11  ;;  %1996 = vadd.xlane.f32.xlu1 %v1947_v14  ;;  %vm1421_vm4 = vcmp.gt.f32.partialorder %v1375_v23, 0.0  ;;  %v1453_v58 = vmul.f32 0.01, %v1375_v23  ;;  %vm1797_vm5 = vcmp.gt.f32.partialorder %v1751_v30, 0.0 }
 0x356   : > { %v1829_v32 = vmul.f32 0.01, %v1751_v30  ;;  %v1858_v40 = vsel %vm1794_vm3, %v1740_v55, %v1826_v27  ;;  %vm1419_vm6 = vcmp.gt.f32.partialorder %v1367_v36, 0.0  ;;  %v1451_v1 = vmul.f32 0.01, %v1367_v36 }
 0x357   : > { %v1743_v16 = vadd.f32 %v3952_v34, %v4167_v24  ;;  %v1485_v50 = vsel %vm1421_vm4, %v1375_v23, %v1453_v58  ;;  %v4245_v17 = vadd.f32 %v4163_v19, %v4161_v18  ;;  %v4247_v28 = vadd.f32 %v1857_v47, %v1481_v45 }
 0x358   : > { %v1861_v26 = vsel %vm1797_vm5, %v1751_v30, %v1829_v32  ;;  %v1483_v51 = vsel %vm1419_vm6, %v1367_v36, %v1451_v1  ;;  %v4251_v11 = vadd.f32 %v4172_v39, %v4169_v25  ;;  %v1388_v19 = vadd.f32 %v4175_v42, %v3947_v33 }
 0x359   : > { %vm1795_vm7 = vcmp.gt.f32.partialorder %v1743_v16, 0.0  ;;  %v1827_v35 = vmul.f32 0.01, %v1743_v16  ;;  %1920 = vst [vmem:[%s3858_s0 + $0xb0] sm:$0xff] %v4245_v17  ;;  %v1952_v24 = vmul.f32 %v4245_v17, %v4245_v17  ;;  %1921 = vst [vmem:[%s3858_s0 + $0xb8] sm:$0xff] %v4247_v28  ;;  %v1953_v18 = vmul.f32 %v4247_v28, %v4247_v28 }
 0x35a   : > { %v1764_v45 = vadd.f32 %v4183_v57, %v3952_v34  ;;  %1918 = vst [vmem:[%s3858_s0 + $0xa0] sm:$0xff] %v4251_v11  ;;  %v1950_v25 = vmul.f32 %v4251_v11, %v4251_v11  ;;  %v4270_v39 = vadd.f32 %v1855_v12, %v4187_v43  ;;  %v1380_v61 = vadd.f32 %v3947_v33, %v4185_v62 }
 0x35b   : > { %v1859_v47 = vsel %vm1795_vm7, %v1743_v16, %v1827_v35  ;;  %2006 = vadd.xlane.f32.xlu0 %v1952_v24  ;;  %2008 = vadd.xlane.f32.xlu1 %v1953_v18  ;;  %vm1424_vm8 = vcmp.gt.f32.partialorder %v1388_v19, 0.0  ;;  %v1456_v2 = vmul.f32 0.01, %v1388_v19  ;;  %v1756_v43 = vadd.f32 %v3952_v34, %v4193_v63 }
 0x35c   : > { %vm1800_vm9 = vcmp.gt.f32.partialorder %v1764_v45, 0.0  ;;  %v1832_v42 = vmul.f32 0.01, %v1764_v45  ;;  %1919 = vst [vmem:[%s3858_s0 + $0xa8] sm:$0xff] %v4270_v39  ;;  %v1951_v57 = vmul.f32 %v4270_v39, %v4270_v39  ;;  %vm1422_vm10 = vcmp.gt.f32.partialorder %v1380_v61, 0.0 }
 0x35d   : > { %v1454_v8 = vmul.f32 0.01, %v1380_v61  ;;  %v1488_v12 = vsel %vm1424_vm8, %v1388_v19, %v1456_v2  ;;  %v1391_v62 = vadd.f32 %v4195_v7, %v3947_v33  ;;  %v1767_v22 = vadd.f32 %v4208_v46, %v3952_v34 }
 0x35e   : > { %v1864_v14 = vsel %vm1800_vm9, %v1764_v45, %v1832_v42  ;;  %vm1798_vm11 = vcmp.gt.f32.partialorder %v1756_v43, 0.0  ;;  %v1830_v23 = vmul.f32 0.01, %v1756_v43  ;;  %v1383_v30 = vadd.f32 %v3947_v33, %v4210_v52 }
 0x35f   : > { %v1486_v55 = vsel %vm1422_vm10, %v1380_v61, %v1454_v8  ;;  %2002 = vadd.xlane.f32.xlu0 %v1950_v25  ;;  %2004 = vadd.xlane.f32.xlu1 %v1951_v57  ;;  %vm1425_vm12 = vcmp.gt.f32.partialorder %v1391_v62, 0.0  ;;  %v1457_v27 = vmul.f32 0.01, %v1391_v62  ;;  %vm1801_vm13 = vcmp.gt.f32.partialorder %v1767_v22, 0.0 }
 0x360   : > { %v1833_v63 = vmul.f32 0.01, %v1767_v22  ;;  %v1862_v36 = vsel %vm1798_vm11, %v1756_v43, %v1830_v23  ;;  %vm1423_vm14 = vcmp.gt.f32.partialorder %v1383_v30, 0.0  ;;  %v1455_v7 = vmul.f32 0.01, %v1383_v30 }
 0x361   : > { %v1759_v46 = vadd.f32 %v3952_v34, %v4222_v15  ;;  %v1489_v58 = vsel %vm1425_vm12, %v1391_v62, %v1457_v27  ;;  %v4290_v33 = vadd.f32 %v4232_v49, %v4230_v56  ;;  %v4292_v52 = vadd.f32 %v1861_v26, %v1485_v50 }
 0x362   : > { %v1865_v32 = vsel %vm1801_vm13, %v1767_v22, %v1833_v63  ;;  %v1487_v1 = vsel %vm1423_vm14, %v1383_v30, %v1455_v7  ;;  %v4295_v35 = vadd.f32 %v1858_v40, %v4237_v31  ;;  %v4305_v56 = vadd.f32 %v1859_v47, %v1483_v51 }
 0x363   : > { %vm1799_vm15 = vcmp.gt.f32.partialorder %v1759_v46, 0.0  ;;  %v1831_v16 = vmul.f32 0.01, %v1759_v46  ;;  %1924 = vst [vmem:[%s3858_s0 + $0xd0] sm:$0xff] %v4290_v33  ;;  %v1956_v34 = vmul.f32 %v4290_v33, %v4290_v33  ;;  %1925 = vst [vmem:[%s3858_s0 + $0xd8] sm:$0xff] %v4292_v52  ;;  %v1957_v15 = vmul.f32 %v4292_v52, %v4292_v52 }
 0x364   : > { %v4307_v49 = vadd.f32 %v1862_v36, %v1486_v55  ;;  %1922 = vst [vmem:[%s3858_s0 + $0xc0] sm:$0xff] %v4295_v35  ;;  %v4311_v31 = vadd.f32 %v1864_v14, %v1488_v12  ;;  %v4313_v40 = vadd.f32 %v1865_v32, %v1489_v58  ;;  %1923 = vst [vmem:[%s3858_s0 + $0xc8] sm:$0xff] %v4305_v56 }
 0x365   : > { %v1863_v50 = vsel %vm1799_vm15, %v1759_v46, %v1831_v16  ;;  %2014 = vadd.xlane.f32.xlu0 %v1956_v34  ;;  %2016 = vadd.xlane.f32.xlu1 %v1957_v15  ;;  %v1954_v51 = vmul.f32 %v4295_v35, %v4295_v35  ;;  %v1955_v24 = vmul.f32 %v4305_v56, %v4305_v56 }
 0x366   : > { %1926 = vst [vmem:[%s3858_s0 + $0xe0] sm:$0xff] %v4307_v49  ;;  %v4319_v26 = vadd.f32 %v1863_v50, %v1487_v1  ;;  %1928 = vst [vmem:[%s3858_s0 + $0xf0] sm:$0xff] %v4311_v31  ;;  %v1958_v18 = vmul.f32 %v4307_v49, %v4307_v49  ;;  %v1960_v45 = vmul.f32 %v4311_v31, %v4311_v31 }
 0x367   : > { %1929 = vst [vmem:[%s3858_s0 + $0xf8] sm:$0xff] %v4313_v40  ;;  %v1961_v47 = vmul.f32 %v4313_v40, %v4313_v40 }
 0x368   : > { %1927 = vst [vmem:[%s3858_s0 + $0xe8] sm:$0xff] %v4319_v26  ;;  %v1959_v19 = vmul.f32 %v4319_v26, %v4319_v26 }
 0x369   : > { %2010 = vadd.xlane.f32.xlu0 %v1954_v51  ;;  %2012 = vadd.xlane.f32.xlu1 %v1955_v24 }
 0x36d   : > { %2018 = vadd.xlane.f32.xlu0 %v1958_v18  ;;  %2020 = vadd.xlane.f32.xlu1 %v1959_v19 }
 0x371   : > { %2022 = vadd.xlane.f32.xlu0 %v1960_v45  ;;  %2024 = vadd.xlane.f32.xlu1 %v1961_v47 }
 0x3ad   : > { %v1967_v25 = vpop.xlane.xlu1 %1966  ;;  %v1963_v61 = vpop.xlane.xlu0 %1962 }
 0x3ae   : > { %v2028_v2 = vmax.f32 %v1967_v25, 1e-24  ;;  %v2026_v42 = vmax.f32 %v1963_v61, 1e-24 }
 0x3b0   : > { %2998 = vrsqrt.f32 %v2028_v2 }
 0x3b1   : > { %3000 = vrsqrt.f32 %v2026_v42 }
 0x3b6   : > { %v1969_v57 = vpop.xlane.xlu1 %1968  ;;  %v1965_v8 = vpop.xlane.xlu0 %1964 }
 0x3b7   : > { %v2029_v43 = vmax.f32 %v1969_v57, 1e-24  ;;  %v2027_v12 = vmax.f32 %v1965_v8, 1e-24 }
 0x3b9   : > { %3002 = vrsqrt.f32 %v2029_v43 }
 0x3ba   : > { %v2999_v14 = vpop.eup %2998  ;;  %3004 = vrsqrt.f32 %v2027_v12 }
 0x3bb   : > { %v3001_v62 = vpop.eup %3000  ;;  %v2092_v22 = vmul.f32 %v2999_v14, %v3962_v60 }
 0x3bc   : > { %v2090_v55 = vmul.f32 %v3001_v62, %v3964_v0 }
 0x3bd   : > { %2124 = vst [vmem:[%s3860_s21 + $0x10] sm:$0xff] %v2092_v22 }
 0x3be   : > { %2122 = vst [vmem:[%s3860_s21] sm:$0xff] %v2090_v55 }
 0x3bf   : > { %v1975_v23 = vpop.xlane.xlu0 %1974 }
 0x3c0   : > { %v2032_v30 = vmax.f32 %v1975_v23, 1e-24 }
 0x3c1   : > { %v1977_v27 = vpop.xlane.xlu1 %1976 }
 0x3c2   : > { %3006 = vrsqrt.f32 %v2032_v30  ;;  %v2033_v63 = vmax.f32 %v1977_v27, 1e-24 }
 0x3c3   : > { %v3003_v36 = vpop.eup %3002  ;;  %v1971_v7 = vpop.xlane.xlu0 %1970 }
 0x3c4   : > { %v3005_v46 = vpop.eup %3004  ;;  %v2093_v58 = vmul.f32 %v3003_v36, %v3988_v37  ;;  %3008 = vrsqrt.f32 %v2033_v63  ;;  %v2030_v32 = vmax.f32 %v1971_v7, 1e-24 }
 0x3c5   : > { %v2091_v60 = vmul.f32 %v3005_v46, %v3990_v38  ;;  %v1973_v1 = vpop.xlane.xlu1 %1972 }
 0x3c6   : > { %2125 = vst [vmem:[%s3860_s21 + $0x18] sm:$0xff] %v2093_v58  ;;  %3010 = vrsqrt.f32 %v2030_v32  ;;  %v2031_v0 = vmax.f32 %v1973_v1, 1e-24 }
 0x3c7   : > { %2123 = vst [vmem:[%s3860_s21 + $0x8] sm:$0xff] %v2091_v60 }
 0x3c8   : > { %3012 = vrsqrt.f32 %v2031_v0 }
 0x3ca   : > { %v1983_v16 = vpop.xlane.xlu0 %1982  ;;  %v1985_v34 = vpop.xlane.xlu1 %1984 }
 0x3cb   : > { %v2036_v15 = vmax.f32 %v1983_v16, 1e-24  ;;  %v2037_v50 = vmax.f32 %v1985_v34, 1e-24 }
 0x3cc   : > { %v3007_v51 = vpop.eup %3006 }
 0x3cd   : > { %v2096_v24 = vmul.f32 %v3007_v51, %v4019_v13  ;;  %3014 = vrsqrt.f32 %v2036_v15 }
 0x3ce   : > { %v3009_v37 = vpop.eup %3008  ;;  %3016 = vrsqrt.f32 %v2037_v50  ;;  %v1979_v38 = vpop.xlane.xlu0 %1978 }
 0x3cf   : > { %v1981_v18 = vpop.xlane.xlu1 %1980  ;;  %2128 = vst [vmem:[%s3860_s21 + $0x30] sm:$0xff] %v2096_v24  ;;  %v2097_v19 = vmul.f32 %v3009_v37, %v4025_v20  ;;  %v2034_v45 = vmax.f32 %v1979_v38, 1e-24 }
 0x3d0   : > { %v2035_v47 = vmax.f32 %v1981_v18, 1e-24  ;;  %v3011_v25 = vpop.eup %3010 }
 0x3d1   : > { %2129 = vst [vmem:[%s3860_s21 + $0x38] sm:$0xff] %v2097_v19  ;;  %v2094_v61 = vmul.f32 %v3011_v25, %v4029_v21  ;;  %3018 = vrsqrt.f32 %v2034_v45 }
 0x3d2   : > { %v3013_v2 = vpop.eup %3012  ;;  %3020 = vrsqrt.f32 %v2035_v47 }
 0x3d3   : > { %2126 = vst [vmem:[%s3860_s21 + $0x20] sm:$0xff] %v2094_v61  ;;  %v2095_v13 = vmul.f32 %v3013_v2, %v4045_v29 }
 0x3d4   : > { %v1991_v42 = vpop.xlane.xlu0 %1990  ;;  %v1993_v57 = vpop.xlane.xlu1 %1992 }
 0x3d5   : > { %2127 = vst [vmem:[%s3860_s21 + $0x28] sm:$0xff] %v2095_v13  ;;  %v2040_v8 = vmax.f32 %v1991_v42, 1e-24  ;;  %v2041_v43 = vmax.f32 %v1993_v57, 1e-24 }
 0x3d7   : > { %v3015_v20 = vpop.eup %3014  ;;  %3022 = vrsqrt.f32 %v2040_v8 }
 0x3d8   : > { %v3017_v12 = vpop.eup %3016  ;;  %v2100_v14 = vmul.f32 %v3015_v20, %v4067_v3  ;;  %3024 = vrsqrt.f32 %v2041_v43  ;;  %v1987_v21 = vpop.xlane.xlu0 %1986 }
 0x3d9   : > { %v1989_v62 = vpop.xlane.xlu1 %1988  ;;  %v2101_v22 = vmul.f32 %v3017_v12, %v4070_v4  ;;  %v2038_v29 = vmax.f32 %v1987_v21, 1e-24 }
 0x3da   : > { %v2039_v55 = vmax.f32 %v1989_v62, 1e-24  ;;  %2132 = vst [vmem:[%s3860_s21 + $0x50] sm:$0xff] %v2100_v14 }
 0x3db   : > { %v3019_v23 = vpop.eup %3018  ;;  %2133 = vst [vmem:[%s3860_s21 + $0x58] sm:$0xff] %v2101_v22  ;;  %3026 = vrsqrt.f32 %v2038_v29 }
 0x3dc   : > { %v3021_v30 = vpop.eup %3020  ;;  %v2098_v27 = vmul.f32 %v3019_v23, %v4076_v10  ;;  %3028 = vrsqrt.f32 %v2039_v55 }
 0x3dd   : > { %v2099_v63 = vmul.f32 %v3021_v30, %v4094_v6 }
 0x3de   : > { %2130 = vst [vmem:[%s3860_s21 + $0x40] sm:$0xff] %v2098_v27  ;;  %v1999_v3 = vpop.xlane.xlu0 %1998  ;;  %v2001_v36 = vpop.xlane.xlu1 %2000 }
 0x3df   : > { %2131 = vst [vmem:[%s3860_s21 + $0x48] sm:$0xff] %v2099_v63  ;;  %v2044_v7 = vmax.f32 %v1999_v3, 1e-24  ;;  %v2045_v4 = vmax.f32 %v2001_v36, 1e-24 }
 0x3e1   : > { %v3023_v46 = vpop.eup %3022  ;;  %3030 = vrsqrt.f32 %v2044_v7 }
 0x3e2   : > { %v3025_v58 = vpop.eup %3024  ;;  %v2104_v32 = vmul.f32 %v3023_v46, %v4116_v53  ;;  %3032 = vrsqrt.f32 %v2045_v4  ;;  %v1995_v60 = vpop.xlane.xlu0 %1994 }
 0x3e3   : > { %v1997_v10 = vpop.xlane.xlu1 %1996  ;;  %v2105_v6 = vmul.f32 %v3025_v58, %v4118_v54  ;;  %v2042_v1 = vmax.f32 %v1995_v60, 1e-24 }
 0x3e4   : > { %v2043_v0 = vmax.f32 %v1997_v10, 1e-24  ;;  %2136 = vst [vmem:[%s3860_s21 + $0x70] sm:$0xff] %v2104_v32 }
 0x3e5   : > { %v3027_v16 = vpop.eup %3026  ;;  %2137 = vst [vmem:[%s3860_s21 + $0x78] sm:$0xff] %v2105_v6  ;;  %3034 = vrsqrt.f32 %v2042_v1 }
 0x3e6   : > { %v3029_v34 = vpop.eup %3028  ;;  %v2102_v15 = vmul.f32 %v3027_v16, %v4124_v59  ;;  %3036 = vrsqrt.f32 %v2043_v0 }
 0x3e7   : > { %v2103_v50 = vmul.f32 %v3029_v34, %v4147_v9 }
 0x3e8   : > { %2134 = vst [vmem:[%s3860_s21 + $0x60] sm:$0xff] %v2102_v15  ;;  %v2007_v53 = vpop.xlane.xlu0 %2006  ;;  %v2009_v51 = vpop.xlane.xlu1 %2008 }
 0x3e9   : > { %2135 = vst [vmem:[%s3860_s21 + $0x68] sm:$0xff] %v2103_v50  ;;  %v2048_v24 = vmax.f32 %v2007_v53, 1e-24  ;;  %v2049_v54 = vmax.f32 %v2009_v51, 1e-24 }
 0x3eb   : > { %v3031_v37 = vpop.eup %3030  ;;  %3038 = vrsqrt.f32 %v2048_v24 }
 0x3ec   : > { %v3033_v38 = vpop.eup %3032  ;;  %v2108_v18 = vmul.f32 %v3031_v37, %v4179_v41  ;;  %3040 = vrsqrt.f32 %v2049_v54  ;;  %v2003_v19 = vpop.xlane.xlu0 %2002 }
 0x3ed   : > { %v2005_v59 = vpop.xlane.xlu1 %2004  ;;  %v2109_v9 = vmul.f32 %v3033_v38, %v4181_v48  ;;  %v2046_v45 = vmax.f32 %v2003_v19, 1e-24 }
 0x3ee   : > { %v2047_v47 = vmax.f32 %v2005_v59, 1e-24  ;;  %2140 = vst [vmem:[%s3860_s21 + $0x90] sm:$0xff] %v2108_v18 }
 0x3ef   : > { %v3035_v25 = vpop.eup %3034  ;;  %2141 = vst [vmem:[%s3860_s21 + $0x98] sm:$0xff] %v2109_v9  ;;  %3042 = vrsqrt.f32 %v2046_v45 }
 0x3f0   : > { %v3037_v61 = vpop.eup %3036  ;;  %v2106_v2 = vmul.f32 %v3035_v25, %v4191_v44  ;;  %3044 = vrsqrt.f32 %v2047_v47 }
 0x3f1   : > { %v2107_v13 = vmul.f32 %v3037_v61, %v4218_v5 }
 0x3f2   : > { %2138 = vst [vmem:[%s3860_s21 + $0x80] sm:$0xff] %v2106_v2  ;;  %v2015_v41 = vpop.xlane.xlu0 %2014  ;;  %v2017_v42 = vpop.xlane.xlu1 %2016 }
 0x3f3   : > { %2139 = vst [vmem:[%s3860_s21 + $0x88] sm:$0xff] %v2107_v13  ;;  %v2052_v57 = vmax.f32 %v2015_v41, 1e-24  ;;  %v2053_v48 = vmax.f32 %v2017_v42, 1e-24 }
 0x3f5   : > { %v3039_v8 = vpop.eup %3038  ;;  %3046 = vrsqrt.f32 %v2052_v57 }
 0x3f6   : > { %v3041_v43 = vpop.eup %3040  ;;  %v2112_v20 = vmul.f32 %v3039_v8, %v4245_v17  ;;  %3048 = vrsqrt.f32 %v2053_v48  ;;  %v2011_v12 = vpop.xlane.xlu0 %2010 }
 0x3f7   : > { %v2013_v14 = vpop.xlane.xlu1 %2012  ;;  %v2113_v44 = vmul.f32 %v3041_v43, %v4247_v28  ;;  %v2050_v5 = vmax.f32 %v2011_v12, 1e-24 }
 0x3f8   : > { %v2051_v21 = vmax.f32 %v2013_v14, 1e-24  ;;  %2144 = vst [vmem:[%s3860_s21 + $0xb0] sm:$0xff] %v2112_v20 }
 0x3f9   : > { %v3043_v62 = vpop.eup %3042  ;;  %2145 = vst [vmem:[%s3860_s21 + $0xb8] sm:$0xff] %v2113_v44  ;;  %3050 = vrsqrt.f32 %v2050_v5 }
 0x3fa   : > { %v3045_v22 = vpop.eup %3044  ;;  %v2110_v29 = vmul.f32 %v3043_v62, %v4251_v11  ;;  %3052 = vrsqrt.f32 %v2051_v21  ;;  %v2019_v55 = vpop.xlane.xlu0 %2018 }
 0x3fb   : > { %v2021_v23 = vpop.xlane.xlu1 %2020  ;;  %v2111_v17 = vmul.f32 %v3045_v22, %v4270_v39  ;;  %v2054_v30 = vmax.f32 %v2019_v55, 1e-24 }
 0x3fc   : > { %v2055_v27 = vmax.f32 %v2021_v23, 1e-24  ;;  %2142 = vst [vmem:[%s3860_s21 + $0xa0] sm:$0xff] %v2110_v29 }
 0x3fd   : > { %2143 = vst [vmem:[%s3860_s21 + $0xa8] sm:$0xff] %v2111_v17  ;;  %3054 = vrsqrt.f32 %v2054_v30 }
 0x3fe   : > { %3056 = vrsqrt.f32 %v2055_v27  ;;  %v2023_v28 = vpop.xlane.xlu0 %2022 }
 0x3ff   : > { %v2025_v63 = vpop.xlane.xlu1 %2024  ;;  %v3047_v3 = vpop.eup %3046  ;;  %v2056_v36 = vmax.f32 %v2023_v28, 1e-24 }
 0x400   : > { %v2057_v11 = vmax.f32 %v2025_v63, 1e-24  ;;  %v3049_v7 = vpop.eup %3048  ;;  %v2116_v4 = vmul.f32 %v3047_v3, %v4290_v33 }
 0x401   : > { %v2117_v39 = vmul.f32 %v3049_v7, %v4292_v52  ;;  %3058 = vrsqrt.f32 %v2056_v36 }
 0x402   : > { %2148 = vst [vmem:[%s3860_s21 + $0xd0] sm:$0xff] %v2116_v4  ;;  %3060 = vrsqrt.f32 %v2057_v11 }
 0x403   : > { %v3051_v46 = vpop.eup %3050  ;;  %2149 = vst [vmem:[%s3860_s21 + $0xd8] sm:$0xff] %v2117_v39 }
 0x404   : > { %v3053_v58 = vpop.eup %3052  ;;  %v2114_v32 = vmul.f32 %v3051_v46, %v4295_v35 }
 0x405   : > { %v2115_v60 = vmul.f32 %v3053_v58, %v4305_v56 }
 0x406   : > { %2146 = vst [vmem:[%s3860_s21 + $0xc0] sm:$0xff] %v2114_v32 }
 0x407   : > { %v3055_v10 = vpop.eup %3054  ;;  %2147 = vst [vmem:[%s3860_s21 + $0xc8] sm:$0xff] %v2115_v60 }
 0x408   : > { %v3057_v33 = vpop.eup %3056  ;;  %v2118_v6 = vmul.f32 %v3055_v10, %v4307_v49 }
 0x409   : > { %v2119_v52 = vmul.f32 %v3057_v33, %v4319_v26 }
 0x40a   : > { %2150 = vst [vmem:[%s3860_s21 + $0xe0] sm:$0xff] %v2118_v6 }
 0x40b   : > { %v3059_v1 = vpop.eup %3058  ;;  %2151 = vst [vmem:[%s3860_s21 + $0xe8] sm:$0xff] %v2119_v52 }
 0x40c   : > { %v3061_v0 = vpop.eup %3060  ;;  %v2120_v16 = vmul.f32 %v3059_v1, %v4311_v31 }
 0x40d   : > { %v2121_v34 = vmul.f32 %v3061_v0, %v4313_v40 }
 0x40e   : > { %2152 = vst [vmem:[%s3860_s21 + $0xf0] sm:$0xff] %v2120_v16 }
 0x40f   : > { %2153 = vst [vmem:[%s3860_s21 + $0xf8] sm:$0xff] %v2121_v34 }
 0x410 PF: > { %s4623_s3 = sld [smem:[#allocation24_spill]]  ;;  %s2173_s19 = sshll.u32 %s3858_s0, 4  ;;  %s4412_s19 = int_to_ptr.vmem [resolvable:$true] %s2173_s19 }
 0x411   : > { %s4624_s23 = sld [smem:[#allocation36_spill]]  ;;  %s2155_s6 = scalar_lea.sflag [#allocation5], %s3845_s24 }
 0x412   : > { %s3208_s14 = scalar_lea.vmem %s4412_s19, 4096  ;;  %p4625_p8 = scmp.ne.s32.totalorder %s4605_s7, 0 }
 0x413   : > { %p3209_p13 = scmp.ne.s32.totalorder %s4412_s19, %s3208_s14  ;;  %s3411_s11 = smov [#allocation12]  }
 0x414   : > { %s3212_s10 = sshll.u32 %s3411_s11, 4  ;;  %s3213_s10 = int_to_ptr.vmem [resolvable:$false] %s3212_s10 }
 0x415   : > { %p3210_p11 = pnand %p3209_p13, %p4625_p8  ;;  %s3214_s8 = scalar_lea.vmem %s3213_s10, 8192 }
 0x416   : > { %s2474_s20 = sshll.u32 %s4623_s3, 12  ;;  %p3215_p9 = scmp.lt.s32.totalorder %s4412_s19, %s3213_s10 }
 0x417   : > { %s4409_s9 = scalar_lea.hbm %s4624_s23, %s2474_s20  ;;  %p3211_p3 = pneg %p3210_p11 }
 0x418   : > { %p3216_p1 = scmp.lt.s32.totalorder %s3214_s8, %s3208_s14 }
 0x41a   : > { %p3217_p6 = por %p3216_p1, %p3215_p9 }
 0x41c   : > { %p3218_p4 = pnand %p3217_p6, %p3211_p3 }
 0x41e   : > { %3221 = shalt.err (!%p3218_p4)
}
 0x41f   : > { %s3222_s0 = scalar_lea.hbm %s4409_s9, 4096  ;;  %s3226_s4 = scalar_lea.hbm %s4624_s23, 8192 }
 0x420   : > { %p3223_p10 = scmp.ne.s32.totalorder %s4409_s9, %s3222_s0  ;;  %p3227_p0 = scmp.lt.u32.totalorder %s4409_s9, %s4624_s23 }
 0x421   : > { %p3228_p12 = scmp.lt.u32.totalorder %s3226_s4, %s3222_s0  ;;  %p3230_p13 = scmp.lt.u32.totalorder %s3222_s0, %s4409_s9 }
 0x422   : > { %p3224_p7 = pnand %p3223_p10, %p4625_p8 }
 0x423   : > { %p3229_p5 = por %p3228_p12, %p3227_p0 }
 0x424   : > { %p3225_p2 = pneg %p3224_p7 }
 0x425   : > { %p3231_p11 = por %p3230_p13, %p3229_p5 }
 0x427   : > { %p3232_p3 = pnand %p3231_p11, %p3225_p2 }
 0x429   : > { %3235 = shalt.err (!%p3232_p3)
}
 0x42a   : > { %s3412_s14 = smov 128   ;;  %s3413_s8 = smov 8  }
 0x42b   : > { %2762 = dma.vmem_to_hbm [thread:$0]  (%p4625_p8), %s4412_s19, 4096, %s4409_s9, %s2155_s6, %s3412_s14, %s3412_s14, %s3413_s8  }
 0x42c   : > { %s4626_s30 = sld [smem:[#allocation37_spill]]  ;;  %s2189_s10 = sshll.u32 %s3860_s21, 4  ;;  %s4449_s10 = int_to_ptr.vmem [resolvable:$true] %s2189_s10 }
 0x42d   : > { %s2160_s1 = scalar_lea.sflag [#allocation14], %s3845_s24  ;;  %s3236_s2 = scalar_lea.vmem %s4449_s10, 4096 }
 0x42e   : > { %p3237_p9 = scmp.ne.s32.totalorder %s4449_s10, %s3236_s2  ;;  %s3414_s5 = smov [#allocation13]  }
 0x42f   : > { %s3240_s9 = sshll.u32 %s3414_s5, 4  ;;  %s3241_s9 = int_to_ptr.vmem [resolvable:$false] %s3240_s9 }
 0x430   : > { %p3238_p1 = pnand %p3237_p9, %p4625_p8  ;;  %s3242_s3 = scalar_lea.vmem %s3241_s9, 8192 }
 0x431   : > { %p3243_p4 = scmp.lt.s32.totalorder %s4449_s10, %s3241_s9  ;;  %p3244_p10 = scmp.lt.s32.totalorder %s3242_s3, %s3236_s2 }
 0x432   : > { %s4627_s4 = smov %s4626_s30  ;;  %s4446_s11 = scalar_lea.hbm %s4626_s30, %s2474_s20 }
 0x433   : > { %p3239_p6 = pneg %p3238_p1  ;;  %p3245_p7 = por %p3244_p10, %p3243_p4 }
 0x435   : > { %p3246_p2 = pnand %p3245_p7, %p3239_p6 }
 0x437   : > { %3249 = shalt.err (!%p3246_p2)
}
 0x438   : > { %s3250_s21 = scalar_lea.hbm %s4446_s11, 4096  ;;  %s3254_s5 = scalar_lea.hbm %s4627_s4, 8192 }
 0x439   : > { %p3251_p0 = scmp.ne.s32.totalorder %s4446_s11, %s3250_s21  ;;  %p3255_p13 = scmp.lt.u32.totalorder %s4446_s11, %s4627_s4 }
 0x43a   : > { %p3256_p11 = scmp.lt.u32.totalorder %s3254_s5, %s3250_s21  ;;  %p3258_p9 = scmp.lt.u32.totalorder %s3250_s21, %s4446_s11 }
 0x43b   : > { %p3252_p12 = pnand %p3251_p0, %p4625_p8 }
 0x43c   : > { %p3257_p3 = por %p3256_p11, %p3255_p13 }
 0x43d   : > { %p3253_p5 = pneg %p3252_p12 }
 0x43e   : > { %p3259_p1 = por %p3258_p9, %p3257_p3 }
 0x440   : > { %p3260_p6 = pnand %p3259_p1, %p3253_p5 }
 0x442   : > { %3263 = shalt.err (!%p3260_p6)
}
 0x443   : > { %2763 = dma.vmem_to_hbm [thread:$0]  (%p4625_p8), %s4449_s10, 4096, %s4446_s11, %s2160_s1, %s3412_s14, %s3412_s14, %s3413_s8  }
 0x444 PF: > { %p2795_p4 = scmp.ge.s32.totalorder %s3398_s18, 2  ;;  %s2204_s2 = sand.u32 1, %s3346_s27  }
 0x445   : > { %p4628_p10 = scmp.ne.s32.totalorder %s4606_s25, 0  ;;  %s2205_s15 = scalar_lea.sflag [#allocation5], %s2204_s2 }
 0x447   : > { %p2784_p7 = pnand %p2795_p4, %p4628_p10 }
 0x449   : > { %3337 = dma.done.wait (!%p2784_p7), %s2205_s15, 4096  }
 0x44a   : > { %3339 = vsyncadd (!%p2784_p7), %s2205_s15, 4294963200  ;;  %s2214_s7 = scalar_lea.sflag [#allocation14], %s2204_s2 }
 0x44b   : > { %3341 = dma.done.wait (!%p2784_p7), %s2214_s7, 4096  }
 0x44c   : > { %3343 = vsyncadd (!%p2784_p7), %s2214_s7, 4294963200  ;;  %s32_s18 = sadd.s32 1, %s3398_s18   ;;  %s4630_s30 = sld [smem:[#allocation21_spill]] }
 0x44d   : > { %p4483_p2 = scmp.ge.s32.totalorder %s32_s18, 6   ;;  %s4631_s9 = sld [smem:[#allocation22_spill]] }
 0x44e   : > { %s4632_s10 = sld [smem:[#allocation27_spill]]  ;;  %s4633_s1 = sld [smem:[#allocation25_spill]] }
 0x44f   : > { %s4634_s25 = sld [smem:[#allocation26_spill]]  ;;  %s4635_s27 = smov %s3350_s28 }
 0x450   : > { %s4636_s28 = smov %s3354_s29  ;;  %s4637_s29 = smov %s3759_s26 }
 0x451   : > { %s4638_s11 = smov %s3374_s12  ;;  %s4639_s12 = smov %s3378_s13 }
 0x452   : > { %s4640_s13 = smov %s3694_s22  ;;  %s4641_s14 = smov %s3390_s16 }
 0x453   : > { %s4642_s15 = smov %s3394_s17  ;;  %31 = sbr.rel (!%p4483_p2) target bundleno = 25 (0x19), region = 150 }
 0x454   : > { %s4643_s16 = smov %s4633_s1 }
 0x455   : > { %s4644_s17 = smov %s4634_s25 }
 0x45a   :  { %2219 = vsyncpa [#allocation4], 1 }
 0x45b   :  { %2221 = vsyncpa [#allocation4 + $0x1], 1 }
 0x45c   :  { %2222 = vsyncpa [#allocation7], 1 }
 0x45d   :  { %2224 = vsyncpa [#allocation7 + $0x1], 1 }
 0x45e   :  { %2225 = vsyncpa [#allocation10], 1 }
 0x45f   :  { %2226 = vsyncpa [#allocation5], 1 }
 0x460   :  { %2228 = vsyncpa [#allocation5 + $0x1], 1 }
 0x461   :  { %2229 = vsyncpa [#allocation14], 1 }
 0x462   :  { %2231 = vsyncpa [#allocation14 + $0x1], 1 }

</bundles_post_ra>
